<compile_context>
chip_gen: v6e
topology: v6e:2x2x1
jax: 0.10.0
libtpu: 0.0.40
codegen_flags: <defaults>
</compile_context>

<pallas_src>
import jax
import jax.numpy as jnp
from jax.experimental import pallas as pl
from jax.experimental.pallas import tpu as pltpu


def _swad_kernel(x_ref, w1_ref, b1_ref, w2s_ref, b2s_ref, w2w_ref, b2w_ref,
                 score_ref, width_ref):
    # One (batch, seed-tile) step, NCW orientation (channels on sublanes,
    # seeds on the 128-wide lane axis).
    #   x_ref:   (256, tS)  f32     input slab for one batch element
    #   w1_ref:  (256, 256) bf16    conv1 weight, (C_out, C_in)
    #   b1_ref:  (256, 1)   f32
    #   w2s_ref: (A*D, 256) bf16    conv_swad rows for the score head
    #   b2s_ref: (A*D, 1)   f32
    #   w2w_ref: (A*D, 256) bf16    conv_swad rows for the width head
    #   b2w_ref: (A*D, 1)   f32
    #   score_ref / width_ref: (A*D, tS) f32   lane-dense output tiles
    x = x_ref[...].astype(jnp.bfloat16)                      # native bf16 MXU path
    h = jnp.dot(w1_ref[...], x, preferred_element_type=jnp.float32)
    h = jnp.maximum(h + b1_ref[...], 0.0)                    # bias + ReLU in f32 (VPU)
    hb = h.astype(jnp.bfloat16)
    s = jnp.dot(w2s_ref[...], hb, preferred_element_type=jnp.float32) + b2s_ref[...]
    w = jnp.dot(w2w_ref[...], hb, preferred_element_type=jnp.float32) + b2w_ref[...]
    score_ref[...] = s.astype(score_ref.dtype)
    width_ref[...] = w.astype(width_ref.dtype)


def _pick_seed_tile(S):
    """Seed-dim tile: lane-aligned (multiple of 128) when possible, else full S."""
    if S % 256 == 0:
        return 256
    if S % 128 == 0:
        return 128
    return S  # full dim is always a legal block extent


def _build_swad_call(B, S, AD, tS, single_buffer_params):
    # Weights/biases are grid-invariant; optionally single-buffer them so the
    # second pipeline buffer isn't wasted VMEM (matters most on v7x's 64 MiB).
    kw = dict(pipeline_mode=pl.Buffered(1)) if single_buffer_params else {}

    def const_spec(shape):
        return pl.BlockSpec(shape, lambda b, s: (0, 0), **kw)

    grid_spec = pltpu.PrefetchScalarGridSpec(
        num_scalar_prefetch=0,
        grid=(B, S // tS),
        in_specs=[
            pl.BlockSpec((pl.Squeezed(), 256, tS), lambda b, s: (b, 0, s)),
            const_spec((256, 256)),   # w1
            const_spec((256, 1)),     # b1
            const_spec((AD, 256)),    # w2 (score head)
            const_spec((AD, 1)),      # b2 (score head)
            const_spec((AD, 256)),    # w2 (width head)
            const_spec((AD, 1)),      # b2 (width head)
        ],
        out_specs=[
            pl.BlockSpec((pl.Squeezed(), AD, tS), lambda b, s: (b, 0, s)),
            pl.BlockSpec((pl.Squeezed(), AD, tS), lambda b, s: (b, 0, s)),
        ],
    )
    return pl.pallas_call(
        _swad_kernel,
        out_shape=(
            jax.ShapeDtypeStruct((B, AD, S), jnp.float32),
            jax.ShapeDtypeStruct((B, AD, S), jnp.float32),
        ),
        grid_spec=grid_spec,
        compiler_params=pltpu.CompilerParams(
            dimension_semantics=("parallel", "parallel")),
    )


def swadnet_forward(vp_features, params, num_angle, num_depth):
    """vp_features: (B, 256, S) f32 -> dict with grasp_score_pred / grasp_width_pred,
    each (B, S, num_angle, num_depth), matching the PyTorch module."""
    B, C_in, S = vp_features.shape
    assert C_in == 256
    AD = num_angle * num_depth
    tS = _pick_seed_tile(S)

    # Weights cast to bf16 once (halves per-step weight DMA, native MXU path).
    # conv_swad is split into its two heads so the kernel writes score/width
    # directly instead of a fused (B, 2*A*D, S) tensor sliced by XLA afterwards.
    w1 = params["w1"].astype(jnp.bfloat16)                     # (256, 256) = (C_out, C_in)
    b1 = params["b1"].reshape(256, 1).astype(jnp.float32)
    w2 = params["w2"]                                          # (2*A*D, 256)
    b2 = params["b2"]
    w2s = w2[:AD].astype(jnp.bfloat16)
    w2w = w2[AD:].astype(jnp.bfloat16)
    b2s = b2[:AD].reshape(AD, 1).astype(jnp.float32)
    b2w = b2[AD:].reshape(AD, 1).astype(jnp.float32)

    args = (vp_features, w1, b1, w2s, b2s, w2w, b2w)
    try:
        score_ncw, width_ncw = _build_swad_call(B, S, AD, tS, True)(*args)
    except Exception:
        # pl.Buffered(1) unsupported on this jax build -> default double buffering.
        score_ncw, width_ncw = _build_swad_call(B, S, AD, tS, False)(*args)

    # (B, A*D, S) -> (B, A, D, S) -> (B, S, A, D); equals
    # y.view(B, 2, A, D, S).permute(0, 1, 4, 2, 3)[:, head] from the PyTorch module.
    score = jnp.transpose(score_ncw.reshape(B, num_angle, num_depth, S), (0, 3, 1, 2))
    width = jnp.transpose(width_ncw.reshape(B, num_angle, num_depth, S), (0, 3, 1, 2))

    end_points = {}
    end_points["grasp_score_pred"] = score
    end_points["grasp_width_pred"] = width
    return end_points


def init_params(key, num_angle, num_depth):
    """Deterministic synthetic parameters. Stored as (C_out, C_in) — i.e. the
    nn.Conv1d weight with its size-1 kernel dim squeezed, no transpose needed."""
    C_out = 2 * num_angle * num_depth
    k1, k2, k3, k4 = jax.random.split(key, 4)
    w1 = jax.random.normal(k1, (256, 256), jnp.float32) * (1.0 / jnp.sqrt(256.0))
    b1 = jax.random.normal(k2, (256,), jnp.float32) * 0.01
    w2 = jax.random.normal(k3, (C_out, 256), jnp.float32) * (1.0 / jnp.sqrt(256.0))
    b2 = jax.random.normal(k4, (C_out,), jnp.float32) * 0.01
    return {"w1": w1, "b1": b1, "w2": w2, "b2": b2}


def _reference(vp_features, params, num_angle, num_depth):
    """Pure-JAX f32 reference mirroring the PyTorch forward."""
    B, _, S = vp_features.shape
    h = jnp.einsum("oc,bcs->bos", params["w1"], vp_features,
                   precision="highest") + params["b1"][None, :, None]
    h = jnp.maximum(h, 0.0)
    y = jnp.einsum("oc,bcs->bos", params["w2"], h,
                   precision="highest") + params["b2"][None, :, None]
    y = y.reshape(B, 2, num_angle, num_depth, S).transpose(0, 1, 4, 2, 3)
    return {"grasp_score_pred": y[:, 0], "grasp_width_pred": y[:, 1]}


if __name__ == "__main__":
    B = 2
    S = 512                      # num_seed; multiple of 128 -> lane-dense seed tiles
    num_angle, num_depth = 4, 4  # C_out = 2*A*D = 32

    key = jax.random.PRNGKey(0)
    kx, kp = jax.random.split(key)
    vp_features = jax.random.normal(kx, (B, 256, S), jnp.float32)
    params = init_params(kp, num_angle, num_depth)

    out = swadnet_forward(vp_features, params, num_angle, num_depth)
    out = jax.tree_util.tree_map(jax.block_until_ready, out)

    ref = _reference(vp_features, params, num_angle, num_depth)
    assert out["grasp_score_pred"].shape == (B, S, num_angle, num_depth)
    assert out["grasp_width_pred"].shape == (B, S, num_angle, num_depth)
    # bf16 MXU matmuls (f32 accumulation) vs f32 reference -> loosened tolerance.
    assert jnp.allclose(out["grasp_score_pred"], ref["grasp_score_pred"],
                        rtol=5e-2, atol=5e-2)
    assert jnp.allclose(out["grasp_width_pred"], ref["grasp_width_pred"],
                        rtol=5e-2, atol=5e-2)

    print("KERNEL_OK")
</pallas_src>

<mosaic_0001>
module attributes {stable_mosaic.version = 11 : i64} {
  func.func @_swad_kernel(%arg0: i32, %arg1: i32, %arg2: memref<1x256x256xf32, #tpu.memory_space<vmem>>, %arg3: memref<256x256xbf16, #tpu.memory_space<vmem>>, %arg4: memref<256x1xf32, #tpu.memory_space<vmem>>, %arg5: memref<16x256xbf16, #tpu.memory_space<vmem>>, %arg6: memref<16x1xf32, #tpu.memory_space<vmem>>, %arg7: memref<16x256xbf16, #tpu.memory_space<vmem>>, %arg8: memref<16x1xf32, #tpu.memory_space<vmem>>, %arg9: memref<1x16x256xf32, #tpu.memory_space<vmem>>, %arg10: memref<1x16x256xf32, #tpu.memory_space<vmem>>) attributes {dimension_semantics = [#tpu.dimension_semantics<parallel>, #tpu.dimension_semantics<parallel>], iteration_bounds = array<i64: 2, 2>, scalar_prefetch = 0 : i64, scratch_operands = 0 : i64, tpu.core_type = #tpu.core_type<tc>, window_params = [{transform_indices = @transform_0, window_bounds = array<i64: 1, 256, 256>}, {pipeline_mode = #tpu.pipeline_mode<synchronous>, transform_indices = @transform_1, window_bounds = array<i64: 256, 256>}, {pipeline_mode = #tpu.pipeline_mode<synchronous>, transform_indices = @transform_2, window_bounds = array<i64: 256, 1>}, {pipeline_mode = #tpu.pipeline_mode<synchronous>, transform_indices = @transform_3, window_bounds = array<i64: 16, 256>}, {pipeline_mode = #tpu.pipeline_mode<synchronous>, transform_indices = @transform_4, window_bounds = array<i64: 16, 1>}, {pipeline_mode = #tpu.pipeline_mode<synchronous>, transform_indices = @transform_5, window_bounds = array<i64: 16, 256>}, {pipeline_mode = #tpu.pipeline_mode<synchronous>, transform_indices = @transform_6, window_bounds = array<i64: 16, 1>}, {transform_indices = @transform_7, window_bounds = array<i64: 1, 16, 256>}, {transform_indices = @transform_8, window_bounds = array<i64: 1, 16, 256>}]} {
    %c0 = arith.constant 0 : index
    %c0_0 = arith.constant 0 : index
    %c0_1 = arith.constant 0 : index
    %0 = vector.load %arg2[%c0, %c0_0, %c0_1] : memref<1x256x256xf32, #tpu.memory_space<vmem>>, vector<1x256x256xf32>
    %1 = vector.shape_cast %0 : vector<1x256x256xf32> to vector<256x256xf32>
    %2 = arith.truncf %1 : vector<256x256xf32> to vector<256x256xbf16>
    %c0_2 = arith.constant 0 : index
    %c0_3 = arith.constant 0 : index
    %3 = vector.load %arg3[%c0_2, %c0_3] : memref<256x256xbf16, #tpu.memory_space<vmem>>, vector<256x256xbf16>
    %cst = arith.constant dense<0.000000e+00> : vector<256x256xf32>
    %4 = tpu.matmul %3, %2, %cst {dimension_numbers = #tpu.dot_dimension_numbers<[1], [0], [0], [1], [0, 0, 1, 1], [], []>} : vector<256x256xbf16>, vector<256x256xbf16>, vector<256x256xf32> -> vector<256x256xf32>
    %c0_4 = arith.constant 0 : index
    %c0_5 = arith.constant 0 : index
    %5 = vector.load %arg4[%c0_4, %c0_5] : memref<256x1xf32, #tpu.memory_space<vmem>>, vector<256x1xf32>
    %6 = vector.broadcast %5 : vector<256x1xf32> to vector<256x256xf32>
    %7 = arith.addf %4, %6 : vector<256x256xf32>
    %cst_6 = arith.constant 0.000000e+00 : f32
    %8 = vector.broadcast %cst_6 : f32 to vector<256x256xf32>
    %9 = arith.maximumf %7, %8 : vector<256x256xf32>
    %10 = arith.truncf %9 : vector<256x256xf32> to vector<256x256xbf16>
    %c0_7 = arith.constant 0 : index
    %c0_8 = arith.constant 0 : index
    %11 = vector.load %arg5[%c0_7, %c0_8] : memref<16x256xbf16, #tpu.memory_space<vmem>>, vector<16x256xbf16>
    %cst_9 = arith.constant dense<0.000000e+00> : vector<16x256xf32>
    %12 = tpu.matmul %11, %10, %cst_9 {dimension_numbers = #tpu.dot_dimension_numbers<[1], [0], [0], [1], [0, 0, 1, 1], [], []>} : vector<16x256xbf16>, vector<256x256xbf16>, vector<16x256xf32> -> vector<16x256xf32>
    %c0_10 = arith.constant 0 : index
    %c0_11 = arith.constant 0 : index
    %13 = vector.load %arg6[%c0_10, %c0_11] : memref<16x1xf32, #tpu.memory_space<vmem>>, vector<16x1xf32>
    %14 = vector.broadcast %13 : vector<16x1xf32> to vector<16x256xf32>
    %15 = arith.addf %12, %14 : vector<16x256xf32>
    %c0_12 = arith.constant 0 : index
    %c0_13 = arith.constant 0 : index
    %16 = vector.load %arg7[%c0_12, %c0_13] : memref<16x256xbf16, #tpu.memory_space<vmem>>, vector<16x256xbf16>
    %cst_14 = arith.constant dense<0.000000e+00> : vector<16x256xf32>
    %17 = tpu.matmul %16, %10, %cst_14 {dimension_numbers = #tpu.dot_dimension_numbers<[1], [0], [0], [1], [0, 0, 1, 1], [], []>} : vector<16x256xbf16>, vector<256x256xbf16>, vector<16x256xf32> -> vector<16x256xf32>
    %c0_15 = arith.constant 0 : index
    %c0_16 = arith.constant 0 : index
    %18 = vector.load %arg8[%c0_15, %c0_16] : memref<16x1xf32, #tpu.memory_space<vmem>>, vector<16x1xf32>
    %19 = vector.broadcast %18 : vector<16x1xf32> to vector<16x256xf32>
    %20 = arith.addf %17, %19 : vector<16x256xf32>
    %c0_17 = arith.constant 0 : index
    %c0_18 = arith.constant 0 : index
    %c0_19 = arith.constant 0 : index
    %21 = vector.load %arg9[%c0_17, %c0_18, %c0_19] : memref<1x16x256xf32, #tpu.memory_space<vmem>>, vector<1x16x256xf32>
    %22 = vector.shape_cast %21 : vector<1x16x256xf32> to vector<16x256xf32>
    %23 = vector.shape_cast %15 : vector<16x256xf32> to vector<1x16x256xf32>
    tpu.vector_store %arg9[%c0_17, %c0_18, %c0_19], %23 {strides = array<i32>} : memref<1x16x256xf32, #tpu.memory_space<vmem>>, vector<1x16x256xf32>,
    %c0_20 = arith.constant 0 : index
    %c0_21 = arith.constant 0 : index
    %c0_22 = arith.constant 0 : index
    %24 = vector.load %arg10[%c0_20, %c0_21, %c0_22] : memref<1x16x256xf32, #tpu.memory_space<vmem>>, vector<1x16x256xf32>
    %25 = vector.shape_cast %24 : vector<1x16x256xf32> to vector<16x256xf32>
    %26 = vector.shape_cast %20 : vector<16x256xf32> to vector<1x16x256xf32>
    tpu.vector_store %arg10[%c0_20, %c0_21, %c0_22], %26 {strides = array<i32>} : memref<1x16x256xf32, #tpu.memory_space<vmem>>, vector<1x16x256xf32>,
    return
  }
  func.func @transform_0(%arg0: i32, %arg1: i32) -> (i32, i32, i32) {
    %c0_i32 = arith.constant 0 : i32
    %c0_i32_0 = arith.constant 0 : i32
    return %arg0, %c0_i32, %arg1 : i32, i32, i32
  }
  func.func @transform_1(%arg0: i32, %arg1: i32) -> (i32, i32) {
    %c0_i32 = arith.constant 0 : i32
    %c0_i32_0 = arith.constant 0 : i32
    %c0_i32_1 = arith.constant 0 : i32
    return %c0_i32, %c0_i32_0 : i32, i32
  }
  func.func @transform_2(%arg0: i32, %arg1: i32) -> (i32, i32) {
    %c0_i32 = arith.constant 0 : i32
    %c0_i32_0 = arith.constant 0 : i32
    %c0_i32_1 = arith.constant 0 : i32
    return %c0_i32, %c0_i32_0 : i32, i32
  }
  func.func @transform_3(%arg0: i32, %arg1: i32) -> (i32, i32) {
    %c0_i32 = arith.constant 0 : i32
    %c0_i32_0 = arith.constant 0 : i32
    %c0_i32_1 = arith.constant 0 : i32
    return %c0_i32, %c0_i32_0 : i32, i32
  }
  func.func @transform_4(%arg0: i32, %arg1: i32) -> (i32, i32) {
    %c0_i32 = arith.constant 0 : i32
    %c0_i32_0 = arith.constant 0 : i32
    %c0_i32_1 = arith.constant 0 : i32
    return %c0_i32, %c0_i32_0 : i32, i32
  }
  func.func @transform_5(%arg0: i32, %arg1: i32) -> (i32, i32) {
    %c0_i32 = arith.constant 0 : i32
    %c0_i32_0 = arith.constant 0 : i32
    %c0_i32_1 = arith.constant 0 : i32
    return %c0_i32, %c0_i32_0 : i32, i32
  }
  func.func @transform_6(%arg0: i32, %arg1: i32) -> (i32, i32) {
    %c0_i32 = arith.constant 0 : i32
    %c0_i32_0 = arith.constant 0 : i32
    %c0_i32_1 = arith.constant 0 : i32
    return %c0_i32, %c0_i32_0 : i32, i32
  }
  func.func @transform_7(%arg0: i32, %arg1: i32) -> (i32, i32, i32) {
    %c0_i32 = arith.constant 0 : i32
    %c0_i32_0 = arith.constant 0 : i32
    return %arg0, %c0_i32, %arg1 : i32, i32, i32
  }
  func.func @transform_8(%arg0: i32, %arg1: i32) -> (i32, i32, i32) {
    %c0_i32 = arith.constant 0 : i32
    %c0_i32_0 = arith.constant 0 : i32
    return %arg0, %c0_i32, %arg1 : i32, i32, i32
  }
}

module attributes {stable_mosaic.version = 11 : i64} {
  func.func @_swad_kernel(%arg0: i32, %arg1: i32, %arg2: memref<1x256x256xf32, #tpu.memory_space<vmem>>, %arg3: memref<256x256xbf16, #tpu.memory_space<vmem>>, %arg4: memref<256x1xf32, #tpu.memory_space<vmem>>, %arg5: memref<16x256xbf16, #tpu.memory_space<vmem>>, %arg6: memref<16x1xf32, #tpu.memory_space<vmem>>, %arg7: memref<16x256xbf16, #tpu.memory_space<vmem>>, %arg8: memref<16x1xf32, #tpu.memory_space<vmem>>, %arg9: memref<1x16x256xf32, #tpu.memory_space<vmem>>, %arg10: memref<1x16x256xf32, #tpu.memory_space<vmem>>) attributes {dimension_semantics = [#tpu.dimension_semantics<parallel>, #tpu.dimension_semantics<parallel>], iteration_bounds = array<i64: 2, 2>, scalar_prefetch = 0 : i64, scratch_operands = 0 : i64, tpu.core_type = #tpu.core_type<tc>, window_params = [{transform_indices = @transform_0, window_bounds = array<i64: 1, 256, 256>}, {pipeline_mode = #tpu.pipeline_mode<synchronous>, transform_indices = @transform_1, window_bounds = array<i64: 256, 256>}, {pipeline_mode = #tpu.pipeline_mode<synchronous>, transform_indices = @transform_2, window_bounds = array<i64: 256, 1>}, {pipeline_mode = #tpu.pipeline_mode<synchronous>, transform_indices = @transform_3, window_bounds = array<i64: 16, 256>}, {pipeline_mode = #tpu.pipeline_mode<synchronous>, transform_indices = @transform_4, window_bounds = array<i64: 16, 1>}, {pipeline_mode = #tpu.pipeline_mode<synchronous>, transform_indices = @transform_5, window_bounds = array<i64: 16, 256>}, {pipeline_mode = #tpu.pipeline_mode<synchronous>, transform_indices = @transform_6, window_bounds = array<i64: 16, 1>}, {transform_indices = @transform_7, window_bounds = array<i64: 1, 16, 256>}, {transform_indices = @transform_8, window_bounds = array<i64: 1, 16, 256>}]} {
    %c0 = arith.constant 0 : index
    %c0_0 = arith.constant 0 : index
    %c0_1 = arith.constant 0 : index
    %0 = vector.load %arg2[%c0, %c0_0, %c0_1] : memref<1x256x256xf32, #tpu.memory_space<vmem>>, vector<1x256x256xf32>
    %1 = vector.shape_cast %0 : vector<1x256x256xf32> to vector<256x256xf32>
    %2 = arith.truncf %1 : vector<256x256xf32> to vector<256x256xbf16>
    %c0_2 = arith.constant 0 : index
    %c0_3 = arith.constant 0 : index
    %3 = vector.load %arg3[%c0_2, %c0_3] : memref<256x256xbf16, #tpu.memory_space<vmem>>, vector<256x256xbf16>
    %cst = arith.constant dense<0.000000e+00> : vector<256x256xf32>
    %4 = tpu.matmul %3, %2, %cst {dimension_numbers = #tpu.dot_dimension_numbers<[1], [0], [0], [1], [0, 0, 1, 1], [], []>} : vector<256x256xbf16>, vector<256x256xbf16>, vector<256x256xf32> -> vector<256x256xf32>
    %c0_4 = arith.constant 0 : index
    %c0_5 = arith.constant 0 : index
    %5 = vector.load %arg4[%c0_4, %c0_5] : memref<256x1xf32, #tpu.memory_space<vmem>>, vector<256x1xf32>
    %6 = vector.broadcast %5 : vector<256x1xf32> to vector<256x256xf32>
    %7 = arith.addf %4, %6 : vector<256x256xf32>
    %cst_6 = arith.constant 0.000000e+00 : f32
    %8 = vector.broadcast %cst_6 : f32 to vector<256x256xf32>
    %9 = arith.maximumf %7, %8 : vector<256x256xf32>
    %10 = arith.truncf %9 : vector<256x256xf32> to vector<256x256xbf16>
    %c0_7 = arith.constant 0 : index
    %c0_8 = arith.constant 0 : index
    %11 = vector.load %arg5[%c0_7, %c0_8] : memref<16x256xbf16, #tpu.memory_space<vmem>>, vector<16x256xbf16>
    %cst_9 = arith.constant dense<0.000000e+00> : vector<16x256xf32>
    %12 = tpu.matmul %11, %10, %cst_9 {dimension_numbers = #tpu.dot_dimension_numbers<[1], [0], [0], [1], [0, 0, 1, 1], [], []>} : vector<16x256xbf16>, vector<256x256xbf16>, vector<16x256xf32> -> vector<16x256xf32>
    %c0_10 = arith.constant 0 : index
    %c0_11 = arith.constant 0 : index
    %13 = vector.load %arg6[%c0_10, %c0_11] : memref<16x1xf32, #tpu.memory_space<vmem>>, vector<16x1xf32>
    %14 = vector.broadcast %13 : vector<16x1xf32> to vector<16x256xf32>
    %15 = arith.addf %12, %14 : vector<16x256xf32>
    %c0_12 = arith.constant 0 : index
    %c0_13 = arith.constant 0 : index
    %16 = vector.load %arg7[%c0_12, %c0_13] : memref<16x256xbf16, #tpu.memory_space<vmem>>, vector<16x256xbf16>
    %cst_14 = arith.constant dense<0.000000e+00> : vector<16x256xf32>
    %17 = tpu.matmul %16, %10, %cst_14 {dimension_numbers = #tpu.dot_dimension_numbers<[1], [0], [0], [1], [0, 0, 1, 1], [], []>} : vector<16x256xbf16>, vector<256x256xbf16>, vector<16x256xf32> -> vector<16x256xf32>
    %c0_15 = arith.constant 0 : index
    %c0_16 = arith.constant 0 : index
    %18 = vector.load %arg8[%c0_15, %c0_16] : memref<16x1xf32, #tpu.memory_space<vmem>>, vector<16x1xf32>
    %19 = vector.broadcast %18 : vector<16x1xf32> to vector<16x256xf32>
    %20 = arith.addf %17, %19 : vector<16x256xf32>
    %c0_17 = arith.constant 0 : index
    %c0_18 = arith.constant 0 : index
    %c0_19 = arith.constant 0 : index
    %21 = vector.load %arg9[%c0_17, %c0_18, %c0_19] : memref<1x16x256xf32, #tpu.memory_space<vmem>>, vector<1x16x256xf32>
    %22 = vector.shape_cast %21 : vector<1x16x256xf32> to vector<16x256xf32>
    %23 = vector.shape_cast %15 : vector<16x256xf32> to vector<1x16x256xf32>
    tpu.vector_store %arg9[%c0_17, %c0_18, %c0_19], %23 {strides = array<i32>} : memref<1x16x256xf32, #tpu.memory_space<vmem>>, vector<1x16x256xf32>,
    %c0_20 = arith.constant 0 : index
    %c0_21 = arith.constant 0 : index
    %c0_22 = arith.constant 0 : index
    %24 = vector.load %arg10[%c0_20, %c0_21, %c0_22] : memref<1x16x256xf32, #tpu.memory_space<vmem>>, vector<1x16x256xf32>
    %25 = vector.shape_cast %24 : vector<1x16x256xf32> to vector<16x256xf32>
    %26 = vector.shape_cast %20 : vector<16x256xf32> to vector<1x16x256xf32>
    tpu.vector_store %arg10[%c0_20, %c0_21, %c0_22], %26 {strides = array<i32>} : memref<1x16x256xf32, #tpu.memory_space<vmem>>, vector<1x16x256xf32>,
    return
  }
  func.func @transform_0(%arg0: i32, %arg1: i32) -> (i32, i32, i32) {
    %c0_i32 = arith.constant 0 : i32
    %c0_i32_0 = arith.constant 0 : i32
    return %arg0, %c0_i32, %arg1 : i32, i32, i32
  }
  func.func @transform_1(%arg0: i32, %arg1: i32) -> (i32, i32) {
    %c0_i32 = arith.constant 0 : i32
    %c0_i32_0 = arith.constant 0 : i32
    %c0_i32_1 = arith.constant 0 : i32
    return %c0_i32, %c0_i32_0 : i32, i32
  }
  func.func @transform_2(%arg0: i32, %arg1: i32) -> (i32, i32) {
    %c0_i32 = arith.constant 0 : i32
    %c0_i32_0 = arith.constant 0 : i32
    %c0_i32_1 = arith.constant 0 : i32
    return %c0_i32, %c0_i32_0 : i32, i32
  }
  func.func @transform_3(%arg0: i32, %arg1: i32) -> (i32, i32) {
    %c0_i32 = arith.constant 0 : i32
    %c0_i32_0 = arith.constant 0 : i32
    %c0_i32_1 = arith.constant 0 : i32
    return %c0_i32, %c0_i32_0 : i32, i32
  }
  func.func @transform_4(%arg0: i32, %arg1: i32) -> (i32, i32) {
    %c0_i32 = arith.constant 0 : i32
    %c0_i32_0 = arith.constant 0 : i32
    %c0_i32_1 = arith.constant 0 : i32
    return %c0_i32, %c0_i32_0 : i32, i32
  }
  func.func @transform_5(%arg0: i32, %arg1: i32) -> (i32, i32) {
    %c0_i32 = arith.constant 0 : i32
    %c0_i32_0 = arith.constant 0 : i32
    %c0_i32_1 = arith.constant 0 : i32
    return %c0_i32, %c0_i32_0 : i32, i32
  }
  func.func @transform_6(%arg0: i32, %arg1: i32) -> (i32, i32) {
    %c0_i32 = arith.constant 0 : i32
    %c0_i32_0 = arith.constant 0 : i32
    %c0_i32_1 = arith.constant 0 : i32
    return %c0_i32, %c0_i32_0 : i32, i32
  }
  func.func @transform_7(%arg0: i32, %arg1: i32) -> (i32, i32, i32) {
    %c0_i32 = arith.constant 0 : i32
    %c0_i32_0 = arith.constant 0 : i32
    return %arg0, %c0_i32, %arg1 : i32, i32, i32
  }
  func.func @transform_8(%arg0: i32, %arg1: i32) -> (i32, i32, i32) {
    %c0_i32 = arith.constant 0 : i32
    %c0_i32_0 = arith.constant 0 : i32
    return %arg0, %c0_i32, %arg1 : i32, i32, i32
  }
}

</mosaic_0001>

<bundles_post_ra>
// kernel: tpu_custom_call.1
= control target key start
LH: loop header
LB: loop body
LE: loop exit
PB: predicated region body
PF: predicated region fallthrough
CT: control target
= control target key end

     0   :  { %s2596_s0 = inlined_call_operand.hbm [shape: f32[2,256,512], index: 0, kind: input, shape index: {}]   ;;  %s2597_s1 = inlined_call_operand.vmem [shape: bf16[256,256], index: 1, kind: input, shape index: {}]   ;;  %s2598_s2 = inlined_call_operand.vmem [shape: f32[256,1], index: 2, kind: input, shape index: {}]   ;;  %s2599_s3 = inlined_call_operand.vmem [shape: bf16[16,256], index: 3, kind: input, shape index: {}]   ;;  %s2600_s4 = inlined_call_operand.vmem [shape: f32[16,1], index: 4, kind: input, shape index: {}]   ;;  %s2601_s5 = inlined_call_operand.vmem [shape: bf16[16,256], index: 5, kind: input, shape index: {}]   ;;  %s2602_s6 = inlined_call_operand.vmem [shape: f32[16,1], index: 6, kind: input, shape index: {}]   ;;  %s2603_s7 = inlined_call_operand.hbm [shape: f32[2,16,512], index: 7, kind: output, shape index: {0}]   ;;  %s2604_s8 = inlined_call_operand.hbm [shape: f32[2,16,512], index: 8, kind: output, shape index: {1}]  }
   0x1   :  { %2619 = sst [smem:[#allocation21_spill]] %s2603_s7 }
   0x2   :  { %2620 = sst [smem:[#allocation22_spill]] %s2604_s8 }
   0x3   :  { %14 = vsyncpa [#allocation3], 0 }
   0x4   :  { %16 = vsyncpa [#allocation3 + $0x1], 0 }
   0x5   :  { %17 = vsyncpa [#allocation4], 0 }
   0x6   :  { %19 = vsyncpa [#allocation4 + $0x1], 0 }
   0x7   :  { %20 = vsyncpa [#allocation7], 0 }
   0x8   :  { %22 = vsyncpa [#allocation7 + $0x1], 0  ;;  %s1848_s27 = smov 0   ;;  %s1850_s28 = smov 0  }
   0x9   :  { %s1852_s29 = smov 0   ;;  %s1854_s30 = smov 0  }
   0xa   :  { %s1856_s9 = smov 0   ;;  %s1858_s10 = smov 0  }
   0xb   :  { %s1860_s11 = smov 0   ;;  %s1862_s12 = smov 0  }
   0xc LB: > { %2621 = sst [smem:[#allocation11_spill]] %s1763_s27  ;;  %s1433_s13 = sadd.s32 4294967295, %s1791_s12   ;;  %s1791_s12 = sphi %s1862_s12, %s28_s12   ;;  %s1787_s11 = sphi %s1860_s11, %s2648_s11   ;;  %s1783_s10 = sphi %s1858_s10, %s2653_s10   ;;  %s1779_s9 = sphi %s1856_s9, %s2646_s9   ;;  %s1775_s30 = sphi %s1854_s30, %s2652_s30   ;;  %s1771_s29 = sphi %s1852_s29, %s2651_s29   ;;  %s1767_s28 = sphi %s1850_s28, %s2650_s28   ;;  %s1763_s27 = sphi %s1848_s27, %s2649_s27  }
   0xd   : > { %2622 = sst [smem:[#allocation12_spill]] %s1787_s11  ;;  %s1434_s14 = sadd.s32 4294967294, %s1791_s12  }
   0xe   : > { %s37_s15 = sadd.s32 1, %s1783_s10  ;;  %s40_s16 = sadd.s32 1, %s1787_s11 }
   0xf   : > { %p38_p0 = scmp.ge.s32.totalorder %s37_s15, 2  ;;  %s49_s17 = sadd.s32 1, %s1771_s29 }
  0x10   : > { %p56_p1 = scmp.ne.s32.totalorder %s1771_s29, %s1767_s28  ;;  %p57_p2 = scmp.eq.s32.totalorder %s1791_s12, 0 }
  0x11   : > { %s2655_s15 = smov (%p38_p0, %s37_s15), 0  ;;  %s2657_s16 = smov (!%p38_p0, %s40_s16), %s1787_s11 }
  0x12   : > { %2623 = sst [smem:[#allocation13_spill]] %s2655_s15  ;;  %s45_s18 = ssub.s32 %s1783_s10, %s2655_s15 }
  0x13   : > { %p1901_p3 = por %p57_p2, %p56_p1  ;;  %p42_p4 = scmp.ge.s32.totalorder %s2657_s16, 2 }
  0x14   : > { %p62_p5 = scmp.ne.s32.totalorder %s1767_s28, %s1763_s27  ;;  %p63_p6 = scmp.eq.s32.totalorder %s1433_s13, 0 }
  0x15   : > { %p214_p7 = scmp.eq.s32.totalorder %s1433_s13, 3  ;;  %s2659_s16 = smov (%p42_p4, %s2657_s16), 0 }
  0x16   : > { %2625 = sst [smem:[#allocation14_spill]] %s2659_s16  ;;  %p1909_p8 = por %p63_p6, %p62_p5 }
  0x17   : > { %p1913_p9 = por %p214_p7, %p56_p1  ;;  %s44_s22 = ssub.s32 %s1787_s11, %s2659_s16 }
  0x18   : > { %p220_p10 = scmp.eq.s32.totalorder %s1434_s14, 3  ;;  %s46_s23 = sor.u32 %s45_s18, %s44_s22 }
  0x19   : > { %s2627_s21 = scalar_select %p1913_p9, 1, 0 }
  0x1a   : > { %p47_p11 = scmp.eq.s32.totalorder %s46_s23, 0  ;;  %p1919_p12 = por %p220_p10, %p62_p5 }
  0x1b   : > { %2628 = sst [smem:[#allocation15_spill]] %s2627_s21  ;;  %p1508_p13 = scmp.lt.s32.totalorder %s1791_s12, 4 }
  0x1c   : > { %s286_s25 = sand.u32 1, %s1771_s29   ;;  %s1438_s15 = sshll.u32 %s1783_s10, 1 }
  0x1d   : > { %s1926_s26 = scalar_select %p47_p11, %s1771_s29, %s49_s17  }
  0x1e   : > { %s1437_s13 = sshll.u32 %s286_s25, 9  ;;  %s1439_s27 = sshll.u32 %s1787_s11, 7 }
  0x1f   : > { %s290_s8 = scalar_lea.vmem [#allocation2], %s1437_s13  ;;  %s296_s21 = sadd.s32 %s1439_s27, %s1438_s15 }
  0x20   : > { %s299_s7 = sshll.u32 %s290_s8, 4  ;;  %s1440_s16 = sshll.u32 %s296_s21, 7  ;;  %s300_s7 = int_to_ptr.vmem [resolvable:$true] %s299_s7 }
  0x21   : > { %p1932_p0 = pnand %p1508_p13, %p1901_p3  ;;  %s298_s23 = scalar_lea.hbm %s2596_s0, %s1440_s16 }
  0x22   : > { %p1441_p1 = scmp.ge.s32.totalorder %s1791_s12, 1  ;;  %s287_s17 = scalar_lea.sflag [#allocation3], %s286_s25 }
  0x23   : > { %p1639_p2 = pneg %p1932_p0  ;;  %s1650_s11 = scalar_lea.vmem %s300_s7, 8192 }
  0x24   : > { %p1651_p4 = scmp.ne.s32.totalorder %s300_s7, %s1650_s11  ;;  %s1793_s8 = smov [#allocation2]  }
  0x25   : > { %s1655_s27 = sshll.u32 %s1793_s8, 4  ;;  %s1656_s27 = int_to_ptr.vmem [resolvable:$false] %s1655_s27 }
  0x26   : > { %p1653_p5 = pnand %p1651_p4, %p1639_p2  ;;  %s1657_s15 = scalar_lea.vmem %s1656_s27, 16384 }
  0x27   : > { %p1658_p3 = scmp.lt.s32.totalorder %s300_s7, %s1656_s27  ;;  %p1659_p7 = scmp.lt.s32.totalorder %s1657_s15, %s1650_s11 }
  0x28   : > { %p1654_p6 = pneg %p1653_p5 }
  0x29   : > { %p1660_p10 = por %p1659_p7, %p1658_p3 }
  0x2b   : > { %p1661_p11 = pnand %p1660_p10, %p1654_p6 }
  0x2d   : > { %1664 = shalt.err (!%p1661_p11)
}
  0x2e   : > { %s1794_s19 = smov 512   ;;  %s1795_s16 = smov 256  }
  0x2f   : > { %s1796_s21 = smov 16   ;;  %p307_p13 = scmp.lt.s32.totalorder %s1791_s12, 5 }
  0x30   : > { %1500 = dma.hbm_to_vmem [thread:$0]  (!%p1932_p0), %s298_s23, 8192, %s300_s7, %s287_s17, %s1794_s19, %s1795_s16, %s1796_s21  }
  0x31   : > { %p308_p2 = pnand %p1441_p1, %p307_p13 }
  0x33   : > { %311 = sbr.rel (%p308_p2) target bundleno = 763 (0x2fb), region = 48 }
  0x38   : > { %s1948_s25 = sand.u32 1, %s1767_s28  }
  0x39   : > { %s1442_s11 = sshll.u32 %s1948_s25, 9  ;;  %s314_s13 = scalar_lea.sflag [#allocation3], %s1948_s25 }
  0x3a   : > { %s1952_s18 = scalar_lea.vmem [#allocation2], %s1442_s11 }
  0x3b   : > { %1750 = dma.done.wait (%p1909_p8), %s314_s13, 8192  }
  0x3c   : > { %1752 = vsyncadd (%p1909_p8), %s314_s13, 4294959104  ;;  %v1797_v0 = vmov 0   ;;  %v387_v1 = vld [vmem:[%s1952_s18 + $0xe8] sm:$0xff]  ;;  %v389_v2 = vld [vmem:[%s1952_s18 + $0xf8] sm:$0xff]  ;;  %s1443_s21 = sshll.u32 %s1948_s25, 5  ;;  %s1484_s11 = sshll.u32 %s1779_s9, 3 }
  0x3d   : > { %1581 = vset.pattern.permute.xlu0 %v1797_v0  ;;  %1582 = vset.pattern.permute.xlu1 %v1797_v0  ;;  %v386_v3 = vld [vmem:[%s1952_s18 + $0xe0] sm:$0xff]  ;;  %v437_v4 = vpack.c.bf16 %v389_v2, %v387_v1  ;;  %v388_v5 = vld [vmem:[%s1952_s18 + $0xf0] sm:$0xff]  ;;  %v383_v6 = vld [vmem:[%s1952_s18 + $0xc8] sm:$0xff]  ;;  %s347_s7 = scalar_lea.vmem [#allocation5], %s1443_s21  ;;  %s2642_s23 = sld [smem:[#allocation21_spill]] }
  0x3e   : > { %v385_v7 = vld [vmem:[%s1952_s18 + $0xd8] sm:$0xff]  ;;  %v436_v8 = vpack.c.bf16 %v388_v5, %v386_v3  ;;  %v382_v10 = vld [vmem:[%s1952_s18 + $0xc0] sm:$0xff]  ;;  %v384_v11 = vld [vmem:[%s1952_s18 + $0xd0] sm:$0xff]  ;;  %s1290_s20 = sshll.u32 %s347_s7, 4  ;;  %s1270_s8 = scalar_lea.sflag [#allocation4], %s1948_s25  ;;  %s2498_s20 = int_to_ptr.vmem [resolvable:$true] %s1290_s20 }
  0x3f   : > { %v435_v9 = vpack.c.bf16 %v385_v7, %v383_v6  ;;  %v379_v12 = vld [vmem:[%s1952_s18 + $0xa8] sm:$0xff]  ;;  %838 = vmatprep.subr.bf16.mxu0 %v437_v4  ;;  %v381_v13 = vld [vmem:[%s1952_s18 + $0xb8] sm:$0xff]  ;;  %v434_v14 = vpack.c.bf16 %v384_v11, %v382_v10  ;;  %v378_v16 = vld [vmem:[%s1952_s18 + $0xa0] sm:$0xff]  ;;  %s1665_s27 = scalar_lea.vmem %s2498_s20, 512  ;;  %s1798_s15 = smov [#allocation5]  }
  0x40   : > { %839 = vmatpush1.bf16.msra.mxu0 %v436_v8  ;;  %v433_v15 = vpack.c.bf16 %v381_v13, %v379_v12  ;;  %v380_v17 = vld [vmem:[%s1952_s18 + $0xb0] sm:$0xff]  ;;  %v375_v18 = vld [vmem:[%s1952_s18 + $0x88] sm:$0xff]  ;;  %v377_v19 = vld [vmem:[%s1952_s18 + $0x98] sm:$0xff]  ;;  %p1666_p8 = scmp.ne.s32.totalorder %s2498_s20, %s1665_s27  ;;  %s1669_s19 = sshll.u32 %s1798_s15, 4  ;;  %s1670_s19 = int_to_ptr.vmem [resolvable:$false] %s1669_s19 }
  0x41   : > { %840 = vmatprep.subr.bf16.mxu0 %v435_v9  ;;  %v432_v20 = vpack.c.bf16 %v380_v17, %v378_v16  ;;  %v431_v21 = vpack.c.bf16 %v377_v19, %v375_v18  ;;  %v374_v22 = vld [vmem:[%s1952_s18 + $0x80] sm:$0xff]  ;;  %v376_v23 = vld [vmem:[%s1952_s18 + $0x90] sm:$0xff]  ;;  %v371_v24 = vld [vmem:[%s1952_s18 + $0x68] sm:$0xff]  ;;  %s1671_s16 = scalar_lea.vmem %s1670_s19, 1024  ;;  %p1672_p4 = scmp.lt.s32.totalorder %s2498_s20, %s1670_s19 }
  0x42   : > { %v373_v25 = vld [vmem:[%s1952_s18 + $0x78] sm:$0xff]  ;;  %v430_v26 = vpack.c.bf16 %v376_v23, %v374_v22  ;;  %v370_v28 = vld [vmem:[%s1952_s18 + $0x60] sm:$0xff]  ;;  %v372_v29 = vld [vmem:[%s1952_s18 + $0x70] sm:$0xff]  ;;  %p1667_p0 = pnand %p1666_p8, %p1913_p9  ;;  %p1673_p5 = scmp.lt.s32.totalorder %s1671_s16, %s1665_s27 }
  0x43   : > { %v429_v27 = vpack.c.bf16 %v373_v25, %v371_v24  ;;  %v367_v30 = vld [vmem:[%s1952_s18 + $0x48] sm:$0xff]  ;;  %v369_v31 = vld [vmem:[%s1952_s18 + $0x58] sm:$0xff]  ;;  %v428_v32 = vpack.c.bf16 %v372_v29, %v370_v28  ;;  %v366_v34 = vld [vmem:[%s1952_s18 + $0x40] sm:$0xff] }
  0x44   : > { %841 = vmatpush1.bf16.msra.mxu0 %v434_v14  ;;  %v427_v33 = vpack.c.bf16 %v369_v31, %v367_v30  ;;  %v368_v35 = vld [vmem:[%s1952_s18 + $0x50] sm:$0xff]  ;;  %v363_v36 = vld [vmem:[%s1952_s18 + $0x28] sm:$0xff]  ;;  %v365_v37 = vld [vmem:[%s1952_s18 + $0x38] sm:$0xff]  ;;  %p1668_p1 = pneg %p1667_p0  ;;  %p1674_p6 = por %p1673_p5, %p1672_p4 }
  0x45   : > { %842 = vmatprep.subr.bf16.mxu0 %v433_v15  ;;  %v426_v38 = vpack.c.bf16 %v368_v35, %v366_v34  ;;  %v362_v39 = vld [vmem:[%s1952_s18 + $0x20] sm:$0xff]  ;;  %v364_v40 = vld [vmem:[%s1952_s18 + $0x30] sm:$0xff]  ;;  %v425_v41 = vpack.c.bf16 %v365_v37, %v363_v36  ;;  %v359_v42 = vld [vmem:[%s1952_s18 + $0x8] sm:$0xff] }
  0x46   : > { %v361_v43 = vld [vmem:[%s1952_s18 + $0x18] sm:$0xff]  ;;  %v1585_v44 = vld [vmem:[%s2597_s1 + $0x4] ss:$8 sps:$4 sm:$0xff]   ;;  %v424_v45 = vpack.c.bf16 %v364_v40, %v362_v39  ;;  %v360_v48 = vld [vmem:[%s1952_s18 + $0x10] sm:$0xff]  ;;  %p1675_p3 = pnand %p1674_p6, %p1668_p1 }
  0x47   : > { %v358_v46 = vld [vmem:[%s1952_s18] sm:$0xff]  ;;  %870 = vmatprep.mubr.bf16.mxu0 %v1585_v44  ;;  %v423_v47 = vpack.c.bf16 %v361_v43, %v359_v42  ;;  %v419_v49 = vld [vmem:[%s1952_s18 + $0x1e8] sm:$0xff]  ;;  %v421_v50 = vld [vmem:[%s1952_s18 + $0x1f8] sm:$0xff] }
  0x48   : > { %843 = vmatpush1.bf16.msra.mxu0 %v432_v20  ;;  %v418_v51 = vld [vmem:[%s1952_s18 + $0x1e0] sm:$0xff]  ;;  %v422_v52 = vpack.c.bf16 %v360_v48, %v358_v46  ;;  %v420_v53 = vld [vmem:[%s1952_s18 + $0x1f0] sm:$0xff]  ;;  %v453_v54 = vpack.c.bf16 %v421_v50, %v419_v49  ;;  %v415_v55 = vld [vmem:[%s1952_s18 + $0x1c8] sm:$0xff] }
  0x49   : > { %844 = vmatprep.subr.bf16.mxu0 %v431_v21  ;;  %v417_v56 = vld [vmem:[%s1952_s18 + $0x1d8] sm:$0xff]  ;;  %v500_v57 = vld [vmem:[%s2598_s2 + $0x70] sm:$0xff]  ;;  %v498_v58 = vld [vmem:[%s2598_s2 + $0x60] sm:$0xff]  ;;  %v452_v60 = vpack.c.bf16 %v420_v53, %v418_v51 }
  0x4a   : > { %590 = vperm.xlu0 %1581, %v500_v57   ;;  %v501_v59 = vld [vmem:[%s2598_s2 + $0x78] sm:$0xff]  ;;  %580 = vperm.xlu1 %1582, %v498_v58   ;;  %v414_v61 = vld [vmem:[%s1952_s18 + $0x1c0] sm:$0xff]  ;;  %v499_v62 = vld [vmem:[%s2598_s2 + $0x68] sm:$0xff]  ;;  %v451_v63 = vpack.c.bf16 %v417_v56, %v415_v55 }
  0x4b   : > { %v416_v0 = vld [vmem:[%s1952_s18 + $0x1d0] sm:$0xff]  ;;  %v411_v1 = vld [vmem:[%s1952_s18 + $0x1a8] sm:$0xff]  ;;  %v413_v2 = vld [vmem:[%s1952_s18 + $0x1b8] sm:$0xff] }
  0x4c   : > { %845 = vmatpush1.bf16.msra.mxu0 %v430_v26  ;;  %v496_v3 = vld [vmem:[%s2598_s2 + $0x50] sm:$0xff]  ;;  %v450_v4 = vpack.c.bf16 %v416_v0, %v414_v61  ;;  %v497_v5 = vld [vmem:[%s2598_s2 + $0x58] sm:$0xff]  ;;  %v449_v6 = vpack.c.bf16 %v413_v2, %v411_v1  ;;  %v410_v7 = vld [vmem:[%s1952_s18 + $0x1a0] sm:$0xff] }
  0x4d   : > { %846 = vmatprep.subr.bf16.mxu0 %v429_v27  ;;  %v412_v8 = vld [vmem:[%s1952_s18 + $0x1b0] sm:$0xff]  ;;  %v407_v9 = vld [vmem:[%s1952_s18 + $0x188] sm:$0xff]  ;;  %v409_v10 = vld [vmem:[%s1952_s18 + $0x198] sm:$0xff] }
  0x4e   : > { %595 = vperm.xlu0 %1581, %v501_v59   ;;  %585 = vperm.xlu1 %1582, %v499_v62   ;;  %v406_v11 = vld [vmem:[%s1952_s18 + $0x180] sm:$0xff]  ;;  %v448_v13 = vpack.c.bf16 %v412_v8, %v410_v7  ;;  %v495_v14 = vld [vmem:[%s2598_s2 + $0x48] sm:$0xff]  ;;  %v447_v15 = vpack.c.bf16 %v409_v10, %v407_v9  ;;  %v408_v16 = vld [vmem:[%s1952_s18 + $0x190] sm:$0xff] }
  0x4f   : > { %v494_v12 = vld [vmem:[%s2598_s2 + $0x40] sm:$0xff]  ;;  %v403_v17 = vld [vmem:[%s1952_s18 + $0x168] sm:$0xff]  ;;  %v405_v18 = vld [vmem:[%s1952_s18 + $0x178] sm:$0xff]  ;;  %v446_v20 = vpack.c.bf16 %v408_v16, %v406_v11 }
  0x50   : > { %847 = vmatpush1.bf16.msra.mxu0 %v428_v32  ;;  %v492_v19 = vld [vmem:[%s2598_s2 + $0x30] sm:$0xff]  ;;  %v493_v21 = vld [vmem:[%s2598_s2 + $0x38] sm:$0xff]  ;;  %v445_v22 = vpack.c.bf16 %v405_v18, %v403_v17  ;;  %v402_v23 = vld [vmem:[%s1952_s18 + $0x160] sm:$0xff] }
  0x51   : > { %848 = vmatprep.subr.bf16.mxu0 %v427_v33  ;;  %v404_v24 = vld [vmem:[%s1952_s18 + $0x170] sm:$0xff]  ;;  %v399_v25 = vld [vmem:[%s1952_s18 + $0x148] sm:$0xff]  ;;  %v401_v26 = vld [vmem:[%s1952_s18 + $0x158] sm:$0xff] }
  0x52   : > { %570 = vperm.xlu0 %1581, %v496_v3   ;;  %575 = vperm.xlu1 %1582, %v497_v5   ;;  %v398_v27 = vld [vmem:[%s1952_s18 + $0x140] sm:$0xff]  ;;  %v491_v29 = vld [vmem:[%s2598_s2 + $0x28] sm:$0xff]  ;;  %v444_v30 = vpack.c.bf16 %v404_v24, %v402_v23  ;;  %v443_v31 = vpack.c.bf16 %v401_v26, %v399_v25  ;;  %v400_v32 = vld [vmem:[%s1952_s18 + $0x150] sm:$0xff] }
  0x53   : > { %v490_v28 = vld [vmem:[%s2598_s2 + $0x20] sm:$0xff]  ;;  %v395_v33 = vld [vmem:[%s1952_s18 + $0x128] sm:$0xff]  ;;  %v397_v34 = vld [vmem:[%s1952_s18 + $0x138] sm:$0xff]  ;;  %v442_v36 = vpack.c.bf16 %v400_v32, %v398_v27 }
  0x54   : > { %849 = vmatpush1.bf16.msra.mxu0 %v426_v38  ;;  %v488_v35 = vld [vmem:[%s2598_s2 + $0x10] sm:$0xff]  ;;  %v489_v37 = vld [vmem:[%s2598_s2 + $0x18] sm:$0xff]  ;;  %v441_v38 = vpack.c.bf16 %v397_v34, %v395_v33  ;;  %v394_v39 = vld [vmem:[%s1952_s18 + $0x120] sm:$0xff] }
  0x55   : > { %850 = vmatprep.subr.bf16.mxu0 %v425_v41  ;;  %v396_v40 = vld [vmem:[%s1952_s18 + $0x130] sm:$0xff]  ;;  %v391_v41 = vld [vmem:[%s1952_s18 + $0x108] sm:$0xff]  ;;  %v393_v42 = vld [vmem:[%s1952_s18 + $0x118] sm:$0xff] }
  0x56   : > { %560 = vperm.xlu0 %1581, %v494_v12   ;;  %565 = vperm.xlu1 %1582, %v495_v14   ;;  %v486_v43 = vld [vmem:[%s2598_s2] sm:$0xff]  ;;  %v440_v44 = vpack.c.bf16 %v396_v40, %v394_v39  ;;  %v439_v46 = vpack.c.bf16 %v393_v42, %v391_v41  ;;  %v392_v48 = vld [vmem:[%s1952_s18 + $0x110] sm:$0xff]  ;;  %v517_v51 = vld [vmem:[%s2598_s2 + $0xf8] sm:$0xff] }
  0x57   : > { %v516_v49 = vld [vmem:[%s2598_s2 + $0xf0] sm:$0xff]  ;;  %v514_v53 = vld [vmem:[%s2598_s2 + $0xe0] sm:$0xff]  ;;  %v515_v55 = vld [vmem:[%s2598_s2 + $0xe8] sm:$0xff] }
  0x58   : > { %851 = vmatpush1.bf16.msra.mxu0 %v424_v45  ;;  %v487_v45 = vld [vmem:[%s2598_s2 + $0x8] sm:$0xff]  ;;  %v512_v56 = vld [vmem:[%s2598_s2 + $0xd0] sm:$0xff]  ;;  %v513_v57 = vld [vmem:[%s2598_s2 + $0xd8] sm:$0xff] }
  0x59   : > { %852 = vmatprep.subr.bf16.mxu0 %v423_v47  ;;  %v390_v47 = vld [vmem:[%s1952_s18 + $0x100] sm:$0xff]  ;;  %v1588_v58 = vld [vmem:[%s2597_s1 + $0x10] ss:$8 sps:$4 sm:$0xff]   ;;  %v511_v61 = vld [vmem:[%s2598_s2 + $0xc8] sm:$0xff]  ;;  %s1483_s18 = sshll.u32 %s1775_s30, 1 }
  0x5a   : > { %550 = vperm.xlu0 %1581, %v492_v19   ;;  %555 = vperm.xlu1 %1582, %v493_v21   ;;  %v438_v50 = vpack.c.bf16 %v392_v48, %v390_v47  ;;  %v510_v59 = vld [vmem:[%s2598_s2 + $0xc0] sm:$0xff]  ;;  %v508_v62 = vld [vmem:[%s2598_s2 + $0xb0] sm:$0xff]  ;;  %v507_v3 = vld [vmem:[%s2598_s2 + $0xa8] sm:$0xff]  ;;  %s2493_s13 = sadd.s32 %s1484_s11, %s1483_s18 }
  0x5b   : > { %v1591_v0 = vld [vmem:[%s2597_s1 + $0x20] ss:$8 sps:$4 sm:$0xff]   ;;  %v1592_v2 = vld [vmem:[%s2597_s1 + $0x34] ss:$8 sps:$4 sm:$0xff]   ;;  %v1595_v8 = vld [vmem:[%s2597_s1 + $0x44] ss:$8 sps:$4 sm:$0xff]  }
  0x5c   : > { %853 = vmatpush1.bf16.msra.mxu0 %v422_v52  ;;  %v1583_v52 = vld [vmem:[%s2597_s1] ss:$8 sps:$4 sm:$0xff]   ;;  %v505_v5 = vld [vmem:[%s2598_s2 + $0x98] sm:$0xff]  ;;  %v1601_v17 = vld [vmem:[%s2597_s1 + $0x64] ss:$8 sps:$4 sm:$0xff]   ;;  %s1485_s22 = sshll.u32 %s2493_s13, 7 }
  0x5d   : > { %854 = vmatprep.subr.bf16.mxu0 %v453_v54  ;;  %v1586_v54 = vld [vmem:[%s2597_s1 + $0x14] ss:$8 sps:$4 sm:$0xff]   ;;  %v506_v1 = vld [vmem:[%s2598_s2 + $0xa0] sm:$0xff]  ;;  %v503_v9 = vld [vmem:[%s2598_s2 + $0x88] sm:$0xff]  ;;  %s2505_s17 = scalar_lea.hbm %s2642_s23, %s1485_s22 }
  0x5e   : > { %540 = vperm.xlu0 %1581, %v490_v28   ;;  %545 = vperm.xlu1 %1582, %v491_v29   ;;  %v502_v7 = vld [vmem:[%s2598_s2 + $0x80] sm:$0xff]  ;;  %v1130_v11 = vld [vmem:[%s2600_s4 + $0x8] sm:$0xff]  ;;  %v1598_v14 = vld [vmem:[%s2597_s1 + $0x54] ss:$8 sps:$4 sm:$0xff]  }
  0x5f   : > { %v1129_v10 = vld [vmem:[%s2600_s4] sm:$0xff]  ;;  %v1600_v16 = vld [vmem:[%s2597_s1 + $0x50] ss:$8 sps:$4 sm:$0xff]   ;;  %v1604_v19 = vld [vmem:[%s2597_s1 + $0x74] ss:$8 sps:$4 sm:$0xff]  }
  0x60   : > { %855 = vmatpush2.bf16.msra.mxu0 %v452_v60  ;;  %v1589_v60 = vld [vmem:[%s2597_s1 + $0x24] ss:$8 sps:$4 sm:$0xff]   ;;  %v1597_v12 = vld [vmem:[%s2597_s1 + $0x40] ss:$8 sps:$4 sm:$0xff]   ;;  %v1610_v23 = vld [vmem:[%s2597_s1 + $0x94] ss:$8 sps:$4 sm:$0xff]  }
  0x61   : > { %856 = vmatprep.subr.bf16.mxu0 %v451_v63  ;;  %v509_v63 = vld [vmem:[%s2598_s2 + $0xb8] sm:$0xff]  ;;  %v1603_v18 = vld [vmem:[%s2597_s1 + $0x60] ss:$8 sps:$4 sm:$0xff]   ;;  %v1607_v21 = vld [vmem:[%s2597_s1 + $0x84] ss:$8 sps:$4 sm:$0xff]  }
  0x62   : > { %530 = vperm.xlu0 %1581, %v488_v35   ;;  %535 = vperm.xlu1 %1582, %v489_v37   ;;  %v1612_v24 = vld [vmem:[%s2597_s1 + $0x90] ss:$8 sps:$4 sm:$0xff]   ;;  %v1613_v25 = vld [vmem:[%s2597_s1 + $0xa4] ss:$8 sps:$4 sm:$0xff]   ;;  %v1615_v26 = vld [vmem:[%s2597_s1 + $0xa0] ss:$8 sps:$4 sm:$0xff]  }
  0x63   : > { %v1616_v27 = vld [vmem:[%s2597_s1 + $0xb4] ss:$8 sps:$4 sm:$0xff]   ;;  %v1618_v28 = vld [vmem:[%s2597_s1 + $0xb0] ss:$8 sps:$4 sm:$0xff]   ;;  %v1619_v29 = vld [vmem:[%s2597_s1 + $0xc4] ss:$8 sps:$4 sm:$0xff]  }
  0x64   : > { %857 = vmatpush2.bf16.msra.mxu0 %v450_v4  ;;  %v504_v4 = vld [vmem:[%s2598_s2 + $0x90] sm:$0xff]  ;;  %v1625_v33 = vld [vmem:[%s2597_s1 + $0xe4] ss:$8 sps:$4 sm:$0xff]   ;;  %v1627_v34 = vld [vmem:[%s2597_s1 + $0xe0] ss:$8 sps:$4 sm:$0xff]  }
  0x65   : > { %858 = vmatprep.subr.bf16.mxu0 %v449_v6  ;;  %v1594_v6 = vld [vmem:[%s2597_s1 + $0x30] ss:$8 sps:$4 sm:$0xff]   ;;  %v1628_v35 = vld [vmem:[%s2597_s1 + $0xf4] ss:$8 sps:$4 sm:$0xff]  }
  0x66   : > { %520 = vperm.xlu0 %1581, %v486_v43   ;;  %525 = vperm.xlu1 %1582, %v487_v45   ;;  %v1624_v32 = vld [vmem:[%s2597_s1 + $0xd0] ss:$8 sps:$4 sm:$0xff]  }
  0x68   : > { %859 = vmatpush2.bf16.msra.mxu0 %v448_v13  ;;  %v1196_v13 = vld [vmem:[%s2602_s6] sm:$0xff] }
  0x69   : > { %860 = vmatprep.subr.bf16.mxu0 %v447_v15  ;;  %v1197_v15 = vld [vmem:[%s2602_s6 + $0x8] sm:$0xff] }
  0x6a   : > { %670 = vperm.xlu0 %1581, %v516_v49   ;;  %675 = vperm.xlu1 %1582, %v517_v51  }
  0x6c   : > { %861 = vmatpush2.bf16.msra.mxu0 %v446_v20  ;;  %v1606_v20 = vld [vmem:[%s2597_s1 + $0x70] ss:$8 sps:$4 sm:$0xff]  }
  0x6d   : > { %862 = vmatprep.subr.bf16.mxu0 %v445_v22  ;;  %v1609_v22 = vld [vmem:[%s2597_s1 + $0x80] ss:$8 sps:$4 sm:$0xff]  }
  0x6e   : > { %660 = vperm.xlu0 %1581, %v514_v53   ;;  %665 = vperm.xlu1 %1582, %v515_v55  }
  0x70   : > { %863 = vmatpush2.bf16.msra.mxu0 %v444_v30  ;;  %v1621_v30 = vld [vmem:[%s2597_s1 + $0xc0] ss:$8 sps:$4 sm:$0xff]  }
  0x71   : > { %864 = vmatprep.subr.bf16.mxu0 %v443_v31  ;;  %v1622_v31 = vld [vmem:[%s2597_s1 + $0xd4] ss:$8 sps:$4 sm:$0xff]  }
  0x72   : > { %650 = vperm.xlu0 %1581, %v512_v56   ;;  %655 = vperm.xlu1 %1582, %v513_v57  }
  0x74   : > { %865 = vmatpush2.bf16.msra.mxu0 %v442_v36  ;;  %v1630_v36 = vld [vmem:[%s2597_s1 + $0xf0] ss:$8 sps:$4 sm:$0xff]  }
  0x75   : > { %866 = vmatprep.subr.bf16.mxu0 %v441_v38 }
  0x76   : > { %640 = vperm.xlu0 %1581, %v510_v59   ;;  %645 = vperm.xlu1 %1582, %v511_v61  }
  0x78   : > { %867 = vmatpush2.bf16.msra.mxu0 %v440_v44 }
  0x79   : > { %868 = vmatprep.subr.bf16.mxu0 %v439_v46 }
  0x7a   : > { %630 = vperm.xlu0 %1581, %v508_v62   ;;  %635 = vperm.xlu1 %1582, %v509_v63  }
  0x7c   : > { %869 = vmatpush2.bf16.msra.mxu0 %v438_v50 }
  0x7e   : > { %620 = vperm.xlu0 %1581, %v506_v1   ;;  %625 = vperm.xlu1 %1582, %v507_v3  }
  0x7f   : > { %871 = vmatmul.mubr.bf16.vlgmr.msra.gmra.mxu0 %v1583_v52 }
  0x80   : > { %880 = vmatprep.mubr.bf16.mxu0 %v1586_v54 }
  0x82   : > { %610 = vperm.xlu0 %1581, %v504_v4   ;;  %615 = vperm.xlu1 %1582, %v505_v5  }
  0x86   : > { %600 = vperm.xlu0 %1581, %v502_v7   ;;  %605 = vperm.xlu1 %1582, %v503_v9  }
  0x87   : > { %881 = vmatmul.mubr.bf16.gmra.mxu0 %v1588_v58 }
  0x88   : > { %890 = vmatprep.mubr.bf16.mxu0 %v1589_v60 }
  0x8a   : > { %1133 = vperm.xlu0 %1581, %v1129_v10   ;;  %1138 = vperm.xlu1 %1582, %v1130_v11  }
  0x8e   : > { %1200 = vperm.xlu0 %1581, %v1196_v13   ;;  %1205 = vperm.xlu1 %1582, %v1197_v15  }
  0x8f   : > { %891 = vmatmul.mubr.bf16.gmra.mxu0 %v1591_v0 }
  0x90   : > { %900 = vmatprep.mubr.bf16.mxu0 %v1592_v2 }
  0x97   : > { %901 = vmatmul.mubr.bf16.gmra.mxu0 %v1594_v6 }
  0x98   : > { %910 = vmatprep.mubr.bf16.mxu0 %v1595_v8 }
  0x9f   : > { %911 = vmatmul.mubr.bf16.gmra.mxu0 %v1597_v12 }
  0xa0   : > { %920 = vmatprep.mubr.bf16.mxu0 %v1598_v14 }
  0xa7   : > { %921 = vmatmul.mubr.bf16.gmra.mxu0 %v1600_v16 }
  0xa8   : > { %930 = vmatprep.mubr.bf16.mxu0 %v1601_v17 }
  0xaf   : > { %931 = vmatmul.mubr.bf16.gmra.mxu0 %v1603_v18 }
  0xb0   : > { %940 = vmatprep.mubr.bf16.mxu0 %v1604_v19 }
  0xb7   : > { %941 = vmatmul.mubr.bf16.gmra.mxu0 %v1606_v20 }
  0xb8   : > { %950 = vmatprep.mubr.bf16.mxu0 %v1607_v21 }
  0xbf   : > { %951 = vmatmul.mubr.bf16.gmra.mxu0 %v1609_v22 }
  0xc0   : > { %960 = vmatprep.mubr.bf16.mxu0 %v1610_v23 }
  0xc5   : > { %v2226_v37 = vpop.permute.xlu0 %590  ;;  %v2228_v38 = vpop.permute.xlu1 %580 }
  0xc7   : > { %961 = vmatmul.mubr.bf16.gmra.mxu0 %v1612_v24 }
  0xc8   : > { %970 = vmatprep.mubr.bf16.mxu0 %v1613_v25 }
  0xc9   : > { %v2230_v39 = vpop.permute.xlu0 %595  ;;  %v2232_v40 = vpop.permute.xlu1 %585 }
  0xcd   : > { %v2234_v41 = vpop.permute.xlu0 %570  ;;  %v2236_v42 = vpop.permute.xlu1 %575 }
  0xcf   : > { %971 = vmatmul.mubr.bf16.gmra.mxu0 %v1615_v26 }
  0xd0   : > { %980 = vmatprep.mubr.bf16.mxu0 %v1616_v27 }
  0xd1   : > { %v2238_v43 = vpop.permute.xlu0 %560  ;;  %v2240_v44 = vpop.permute.xlu1 %565 }
  0xd5   : > { %v2242_v45 = vpop.permute.xlu0 %550  ;;  %v2244_v46 = vpop.permute.xlu1 %555 }
  0xd7   : > { %981 = vmatmul.mubr.bf16.gmra.mxu0 %v1618_v28 }
  0xd8   : > { %990 = vmatprep.mubr.bf16.mxu0 %v1619_v29 }
  0xd9   : > { %v2246_v47 = vpop.permute.xlu0 %540  ;;  %v2248_v48 = vpop.permute.xlu1 %545 }
  0xdd   : > { %v531_v49 = vpop.permute.xlu0 %530  ;;  %v536_v50 = vpop.permute.xlu1 %535 }
  0xdf   : > { %991 = vmatmul.mubr.bf16.gmra.mxu0 %v1621_v30 }
  0xe0   : > { %1000 = vmatprep.mubr.bf16.mxu0 %v1622_v31 }
  0xe1   : > { %v521_v51 = vpop.permute.xlu0 %520  ;;  %v526_v54 = vpop.permute.xlu1 %525 }
  0xe5   : > { %v2266_v21 = vpop.permute.xlu0 %670  ;;  %v2270_v23 = vpop.permute.xlu1 %675 }
  0xe7   : > { %1001 = vmatmul.mubr.bf16.gmra.mxu0 %v1624_v32  ;;  %v1633_v32 = vld [vmem:[%s2599_s3 + $0x4] ss:$8 sps:$4 sm:$0xff]  }
  0xe8   : > { %1010 = vmatprep.mubr.bf16.mxu0 %v1625_v33  ;;  %1183 = vmatprep.mubr.bf16.mxu1 %v1633_v32 }
  0xe9   : > { %v2276_v26 = vpop.permute.xlu0 %660  ;;  %v2278_v28 = vpop.permute.xlu1 %665 }
  0xed   : > { %v2282_v31 = vpop.permute.xlu0 %650 }
  0xef   : > { %1011 = vmatmul.mubr.bf16.gmra.mxu0 %v1627_v34  ;;  %v2289_v34 = vpop.permute.xlu1 %655 }
  0xf0   : > { %1020 = vmatprep.mubr.bf16.mxu0 %v1628_v35 }
  0xf7   : > { %1021 = vmatmul.mubr.bf16.gmra.mxu0 %v1630_v36 }
 0x13f   : > { %v872_v52 = vpop.f32.mrf.mxu0 }
 0x140   : > { %v873_v55 = vadd.f32 %v872_v52, %v521_v51 }
 0x141   : > { %v874_v53 = vpop.f32.mrf.mxu0 }
 0x142   : > { %v875_v57 = vadd.f32 %v874_v53, %v521_v51  ;;  %v1031_v60 = vmax.f32 %v873_v55, 0.0  ;;  %v2293_v51 = vpop.permute.xlu1 %645 }
 0x143   : > { %v876_v56 = vpop.f32.mrf.mxu0 }
 0x144   : > { %v877_v58 = vadd.f32 %v876_v56, %v526_v54  ;;  %v1032_v0 = vmax.f32 %v875_v57, 0.0 }
 0x145   : > { %v878_v59 = vpop.f32.mrf.mxu0 }
 0x146   : > { %v1033_v61 = vmax.f32 %v877_v58, 0.0  ;;  %v879_v62 = vadd.f32 %v878_v59, %v526_v54  ;;  %v2297_v56 = vpop.permute.xlu1 %635 }
 0x147   : > { %v882_v63 = vpop.f32.mrf.mxu0  ;;  %2633 = vst [vmem:[#allocation18_spill] sm:$0xff] %v2297_v56 }
 0x148   : > { %v2250_v1 = vpack.c.bf16 %v1033_v61, %v1031_v60  ;;  %v1034_v2 = vmax.f32 %v879_v62, 0.0  ;;  %v883_v5 = vadd.f32 %v882_v63, %v531_v49 }
 0x149   : > { %v884_v3 = vpop.f32.mrf.mxu0 }
 0x14a   : > { %v2252_v4 = vpack.c.bf16 %v1034_v2, %v1032_v0  ;;  %v885_v7 = vadd.f32 %v884_v3, %v531_v49  ;;  %v1035_v10 = vmax.f32 %v883_v5, 0.0  ;;  %v2291_v49 = vpop.permute.xlu0 %640  ;;  %v2301_v61 = vpop.permute.xlu1 %625 }
 0x14b   : > { %v886_v6 = vpop.f32.mrf.mxu0  ;;  %2631 = vst [vmem:[#allocation16_spill] sm:$0xff] %v2291_v49  ;;  %2635 = vst [vmem:[#allocation20_spill] sm:$0xff] %v2301_v61 }
 0x14c   : > { %v887_v8 = vadd.f32 %v886_v6, %v536_v50  ;;  %v1036_v14 = vmax.f32 %v885_v7, 0.0 }
 0x14d   : > { %v888_v9 = vpop.f32.mrf.mxu0 }
 0x14e   : > { %v1037_v11 = vmax.f32 %v887_v8, 0.0  ;;  %v889_v12 = vadd.f32 %v888_v9, %v536_v50  ;;  %v2295_v54 = vpop.permute.xlu0 %630  ;;  %v2305_v3 = vpop.permute.xlu1 %615 }
 0x14f   : > { %v2254_v13 = vpop.f32.mrf.mxu0  ;;  %2632 = vst [vmem:[#allocation17_spill] sm:$0xff] %v2295_v54 }
 0x150   : > { %v2256_v15 = vpack.c.bf16 %v1037_v11, %v1035_v10  ;;  %v1038_v16 = vmax.f32 %v889_v12, 0.0 }
 0x151   : > { %v2258_v17 = vpop.f32.mrf.mxu0 }
 0x152   : > { %v2260_v18 = vpack.c.bf16 %v1038_v16, %v1036_v14  ;;  %v2299_v59 = vpop.permute.xlu0 %620 }
 0x153   : > { %v2262_v19 = vpop.f32.mrf.mxu0  ;;  %2634 = vst [vmem:[#allocation19_spill] sm:$0xff] %v2299_v59 }
 0x155   : > { %v2264_v20 = vpop.f32.mrf.mxu0 }
 0x156   : > { %v2303_v0 = vpop.permute.xlu0 %610 }
 0x157   : > { %v2268_v22 = vpop.f32.mrf.mxu0 }
 0x159   : > { %v2272_v24 = vpop.f32.mrf.mxu0 }
 0x15a   : > { %v601_v16 = vpop.permute.xlu0 %600 }
 0x15b   : > { %v2274_v25 = vpop.f32.mrf.mxu0 }
 0x15d   : > { %v908_v27 = vpop.f32.mrf.mxu0 }
 0x15f   : > { %v2280_v29 = vpop.f32.mrf.mxu0 }
 0x161   : > { %v914_v30 = vpop.f32.mrf.mxu0 }
 0x163   : > { %v2287_v33 = vpop.f32.mrf.mxu0 }
 0x165   : > { %v918_v35 = vpop.f32.mrf.mxu0 }
 0x167   : > { %v922_v36 = vpop.f32.mrf.mxu0 }
 0x169   : > { %v924_v50 = vpop.f32.mrf.mxu0 }
 0x16b   : > { %v926_v52 = vpop.f32.mrf.mxu0 }
 0x16d   : > { %v928_v53 = vpop.f32.mrf.mxu0 }
 0x16e   : > { %v929_v59 = vadd.f32 %v928_v53, %v2236_v42 }
 0x16f   : > { %v932_v55 = vpop.f32.mrf.mxu0 }
 0x171   : > { %v934_v57 = vpop.f32.mrf.mxu0 }
 0x172   : > { %v935_v10 = vadd.f32 %v934_v57, %v2228_v38 }
 0x173   : > { %v936_v58 = vpop.f32.mrf.mxu0 }
 0x174   : > { %v937_v12 = vadd.f32 %v936_v58, %v2232_v40  ;;  %v1056_v57 = vmax.f32 %v935_v10, 0.0  ;;  %v927_v58 = vadd.f32 %v926_v52, %v2236_v42 }
 0x175   : > { %v938_v60 = vpop.f32.mrf.mxu0 }
 0x176   : > { %v939_v5 = vadd.f32 %v938_v60, %v2232_v40  ;;  %v919_v40 = vadd.f32 %v918_v35, %v2240_v44 }
 0x177   : > { %v942_v62 = vpop.f32.mrf.mxu0 }
 0x178   : > { %v943_v8 = vadd.f32 %v942_v62, %v2226_v37  ;;  %v1058_v61 = vmax.f32 %v939_v5, 0.0  ;;  %v925_v62 = vadd.f32 %v924_v50, %v2234_v41  ;;  %v909_v50 = vadd.f32 %v908_v27, %v2244_v46 }
 0x179   : > { %v944_v63 = vpop.f32.mrf.mxu0 }
 0x17a   : > { %v945_v6 = vadd.f32 %v944_v63, %v2226_v37  ;;  %v933_v63 = vadd.f32 %v932_v55, %v2228_v38  ;;  %v606_v37 = vpop.permute.xlu1 %605  ;;  %v1052_v42 = vmax.f32 %v925_v62, 0.0 }
 0x17b   : > { %v946_v2 = vpop.f32.mrf.mxu0 }
 0x17c   : > { %v947_v7 = vadd.f32 %v946_v2, %v2230_v39  ;;  %v1060_v60 = vmax.f32 %v945_v6, 0.0  ;;  %v1059_v2 = vmax.f32 %v943_v8, 0.0  ;;  %v1054_v6 = vmax.f32 %v929_v59, 0.0 }
 0x17d   : > { %v948_v9 = vpop.f32.mrf.mxu0  ;;  %v923_v8 = vadd.f32 %v922_v36, %v2234_v41  ;;  %v1055_v35 = vmax.f32 %v933_v63, 0.0 }
 0x17e   : > { %v949_v11 = vadd.f32 %v948_v9, %v2230_v39  ;;  %v1061_v14 = vmax.f32 %v947_v7, 0.0  ;;  %v1057_v7 = vmax.f32 %v937_v12, 0.0  ;;  %v2323_v9 = vpack.c.bf16 %v1058_v61, %v1056_v57 }
 0x17f   : > { %v952_v32 = vpop.f32.mrf.mxu0  ;;  %v1050_v61 = vmax.f32 %v919_v40, 0.0  ;;  %v1053_v12 = vmax.f32 %v927_v58, 0.0  ;;  %v1046_v40 = vmax.f32 %v909_v50, 0.0 }
 0x180   : > { %v1062_v54 = vmax.f32 %v949_v11, 0.0  ;;  %v953_v49 = vadd.f32 %v952_v32, %v601_v16  ;;  %v2321_v5 = vpack.c.bf16 %v1061_v14, %v1059_v2  ;;  %v2333_v27 = vpack.c.bf16 %v1057_v7, %v1055_v35 }
 0x181   : > { %v954_v56 = vpop.f32.mrf.mxu0  ;;  %v2335_v14 = vpack.c.bf16 %v1054_v6, %v1052_v42  ;;  %v1051_v32 = vmax.f32 %v923_v8, 0.0 }
 0x182   : > { %v2317_v39 = vpack.c.bf16 %v1062_v54, %v1060_v60  ;;  %v955_v38 = vadd.f32 %v954_v56, %v601_v16  ;;  %v915_v54 = vadd.f32 %v914_v30, %v2238_v43  ;;  %v1063_v52 = vmax.f32 %v953_v49, 0.0 }
 0x183   : > { %v956_v53 = vpop.f32.mrf.mxu0  ;;  %v917_v56 = vadd.f32 %v2287_v33, %v2240_v44  ;;  %v913_v49 = vadd.f32 %v2280_v29, %v2238_v43  ;;  %v905_v44 = vadd.f32 %v2272_v24, %v2242_v45  ;;  %v907_v43 = vadd.f32 %v2274_v25, %v2244_v46 }
 0x184   : > { %v957_v55 = vadd.f32 %v956_v53, %v606_v37  ;;  %1151 = vmatprep.subr.bf16.mxu1 %v2317_v39  ;;  %v1064_v41 = vmax.f32 %v955_v38, 0.0  ;;  %v1048_v33 = vmax.f32 %v915_v54, 0.0  ;;  %v2352_v62 = vpack.c.bf16 %v1053_v12, %v1051_v32 }
 0x185   : > { %v958_v10 = vpop.f32.mrf.mxu0  ;;  %1152 = vmatpush1.bf16.msra.mxu1 %v2321_v5  ;;  %v1049_v29 = vmax.f32 %v917_v56, 0.0  ;;  %v895_v53 = vadd.f32 %v2258_v17, %v2246_v47  ;;  %v1047_v6 = vmax.f32 %v913_v49, 0.0  ;;  %v1044_v46 = vmax.f32 %v905_v44, 0.0 }
 0x186   : > { %v1065_v11 = vmax.f32 %v957_v55, 0.0  ;;  %v959_v59 = vadd.f32 %v958_v10, %v606_v37  ;;  %1153 = vmatprep.subr.bf16.mxu1 %v2323_v9  ;;  %v899_v37 = vadd.f32 %v2264_v20, %v2248_v48  ;;  %v2354_v58 = vpack.c.bf16 %v1050_v61, %v1048_v33 }
 0x187   : > { %v962_v30 = vpop.f32.mrf.mxu0  ;;  %v903_v20 = vadd.f32 %v2268_v22, %v2242_v45  ;;  %v1045_v8 = vmax.f32 %v907_v43, 0.0  ;;  %v2367_v17 = vpack.c.bf16 %v1049_v29, %v1047_v6  ;;  %v2371_v45 = vpack.c.bf16 %v1046_v40, %v1044_v46 }
 0x188   : > { %v2337_v36 = vpack.c.bf16 %v1065_v11, %v1063_v52  ;;  %v1066_v16 = vmax.f32 %v959_v59, 0.0  ;;  %v963_v2 = vadd.f32 %v962_v30, %v2303_v0  ;;  %v1042_v54 = vmax.f32 %v899_v37, 0.0 }
 0x189   : > { %v964_v60 = vpop.f32.mrf.mxu0  ;;  %1154 = vmatpush1.bf16.msra.mxu1 %v2333_v27  ;;  %v1043_v52 = vmax.f32 %v903_v20, 0.0 }
 0x18a   : > { %v2344_v63 = vpack.c.bf16 %v1066_v16, %v1064_v41  ;;  %1155 = vmatprep.subr.bf16.mxu1 %v2335_v14  ;;  %v965_v24 = vadd.f32 %v964_v60, %v2303_v0  ;;  %v1067_v25 = vmax.f32 %v963_v2, 0.0  ;;  %v897_v0 = vadd.f32 %v2262_v19, %v2248_v48 }
 0x18b   : > { %v966_v57 = vpop.f32.mrf.mxu0  ;;  %v1040_v48 = vmax.f32 %v895_v53, 0.0  ;;  %v2383_v56 = vpack.c.bf16 %v1045_v8, %v1043_v52 }
 0x18c   : > { %v967_v7 = vadd.f32 %v966_v57, %v2305_v3  ;;  %v1068_v22 = vmax.f32 %v965_v24, 0.0  ;;  %v1041_v59 = vmax.f32 %v897_v0, 0.0 }
 0x18d   : > { %v968_v38 = vpop.f32.mrf.mxu0  ;;  %1156 = vmatpush1.bf16.msra.mxu1 %v2352_v62  ;;  %v2387_v12 = vpack.c.bf16 %v1042_v54, %v1040_v48 }
 0x18e   : > { %v1069_v55 = vmax.f32 %v967_v7, 0.0  ;;  %v969_v50 = vadd.f32 %v968_v38, %v2305_v3  ;;  %1157 = vmatprep.subr.bf16.mxu1 %v2354_v58  ;;  %v893_v3 = vadd.f32 %v2254_v13, %v2246_v47 }
 0x18f   : > { %v2369_v35 = vpop.f32.mrf.mxu0 }
 0x190   : > { %v2373_v10 = vpack.c.bf16 %v1069_v55, %v1067_v25  ;;  %v1070_v42 = vmax.f32 %v969_v50, 0.0  ;;  %v1039_v30 = vmax.f32 %v893_v3, 0.0 }
 0x191   : > { %v2377_v11 = vpop.f32.mrf.mxu0  ;;  %1158 = vmatpush1.bf16.msra.mxu1 %v2367_v17 }
 0x192   : > { %v2380_v19 = vpack.c.bf16 %v1070_v42, %v1068_v22  ;;  %1159 = vmatprep.subr.bf16.mxu1 %v2371_v45  ;;  %v2393_v47 = vpack.c.bf16 %v1041_v59, %v1039_v30 }
 0x193   : > { %v2385_v61 = vpop.f32.mrf.mxu0 }
 0x195   : > { %v2389_v41 = vpop.f32.mrf.mxu0  ;;  %1160 = vmatpush1.bf16.msra.mxu1 %v2383_v56 }
 0x196   : > { %1161 = vmatprep.subr.bf16.mxu1 %v2387_v12 }
 0x197   : > { %v2395_v13 = vpop.f32.mrf.mxu0 }
 0x199   : > { %v2397_v16 = vpop.f32.mrf.mxu0  ;;  %1162 = vmatpush1.bf16.msra.mxu1 %v2393_v47 }
 0x19a   : > { %1163 = vmatprep.subr.bf16.mxu1 %v2260_v18 }
 0x19b   : > { %v2401_v49 = vpop.f32.mrf.mxu0 }
 0x19d   : > { %v988_v32 = vpop.f32.mrf.mxu0  ;;  %1164 = vmatpush1.bf16.msra.mxu1 %v2256_v15 }
 0x19e   : > { %1165 = vmatprep.subr.bf16.mxu1 %v2252_v4 }
 0x19f   : > { %v992_v60 = vpop.f32.mrf.mxu0 }
 0x1a1   : > { %v994_v44 = vpop.f32.mrf.mxu0  ;;  %1166 = vmatpush1.bf16.msra.mxu1 %v2250_v1 }
 0x1a3   : > { %v996_v33 = vpop.f32.mrf.mxu0 }
 0x1a5   : > { %v998_v2 = vpop.f32.mrf.mxu0 }
 0x1a7   : > { %v1002_v37 = vpop.f32.mrf.mxu0 }
 0x1a9   : > { %v1004_v43 = vpop.f32.mrf.mxu0 }
 0x1ab   : > { %v1006_v29 = vpop.f32.mrf.mxu0 }
 0x1ad   : > { %v1008_v57 = vpop.f32.mrf.mxu0 }
 0x1ae   : > { %v1009_v3 = vadd.f32 %v1008_v57, %v2289_v34 }
 0x1af   : > { %v1012_v40 = vpop.f32.mrf.mxu0 }
 0x1b0   : > { %v1013_v30 = vadd.f32 %v1012_v40, %v2276_v26 }
 0x1b1   : > { %v1014_v24 = vpop.f32.mrf.mxu0 }
 0x1b2   : > { %v1015_v54 = vadd.f32 %v1014_v24, %v2276_v26  ;;  %v1007_v24 = vadd.f32 %v1006_v29, %v2289_v34  ;;  %v1003_v26 = vadd.f32 %v1002_v37, %v2282_v31  ;;  %v1087_v40 = vmax.f32 %v1013_v30, 0.0  ;;  %v2640_v30 = vld [vmem:[#allocation19_spill] sm:$0xff] }
 0x1b3   : > { %v1016_v7 = vpop.f32.mrf.mxu0  ;;  %v997_v34 = vadd.f32 %v996_v33, %v2293_v51 }
 0x1b4   : > { %v1017_v22 = vadd.f32 %v1016_v7, %v2278_v28  ;;  %v1086_v7 = vmax.f32 %v1009_v3, 0.0  ;;  %v1085_v29 = vmax.f32 %v1007_v24, 0.0  ;;  %v1083_v37 = vmax.f32 %v1003_v26, 0.0 }
 0x1b5   : > { %v1018_v53 = vpop.f32.mrf.mxu0  ;;  %v1081_v33 = vmax.f32 %v997_v34, 0.0 }
 0x1b6   : > { %v1019_v46 = vadd.f32 %v1018_v53, %v2278_v28  ;;  %v999_v28 = vadd.f32 %v998_v2, %v2293_v51  ;;  %v2637_v2 = vld [vmem:[#allocation18_spill] sm:$0xff] }
 0x1b7   : > { %v1022_v20 = vpop.f32.mrf.mxu0  ;;  %v987_v51 = vadd.f32 %v2401_v49, %v2637_v2 }
 0x1b8   : > { %v1023_v50 = vadd.f32 %v1022_v20, %v2266_v21  ;;  %v1090_v52 = vmax.f32 %v1019_v46, 0.0  ;;  %v1089_v20 = vmax.f32 %v1017_v22, 0.0 }
 0x1b9   : > { %v1024_v6 = vpop.f32.mrf.mxu0 }
 0x1ba   : > { %v1025_v25 = vadd.f32 %v1024_v6, %v2266_v21  ;;  %v1091_v53 = vmax.f32 %v1023_v50, 0.0  ;;  %v1005_v6 = vadd.f32 %v1004_v43, %v2282_v31  ;;  %v2636_v43 = vld [vmem:[#allocation16_spill] sm:$0xff]  ;;  %v989_v50 = vadd.f32 %v988_v32, %v2637_v2 }
 0x1bb   : > { %v1026_v38 = vpop.f32.mrf.mxu0  ;;  %v995_v46 = vadd.f32 %v994_v44, %v2636_v43  ;;  %v993_v31 = vadd.f32 %v992_v60, %v2636_v43  ;;  %v2639_v32 = vld [vmem:[#allocation20_spill] sm:$0xff] }
 0x1bc   : > { %v1027_v55 = vadd.f32 %v1026_v38, %v2270_v23  ;;  %v1092_v48 = vmax.f32 %v1025_v25, 0.0  ;;  %v1088_v38 = vmax.f32 %v1015_v54, 0.0  ;;  %v1084_v25 = vmax.f32 %v1005_v6, 0.0 }
 0x1bd   : > { %v1028_v0 = vpop.f32.mrf.mxu0  ;;  %v1080_v22 = vmax.f32 %v995_v46, 0.0  ;;  %v979_v3 = vadd.f32 %v2389_v41, %v2639_v32  ;;  %v977_v49 = vadd.f32 %v2385_v61, %v2639_v32  ;;  %v1077_v6 = vmax.f32 %v987_v51, 0.0  ;;  %v1636_v61 = vld [vmem:[%s2601_s5 + $0x4] ss:$8 sps:$4 sm:$0xff]  }
 0x1be   : > { %v1029_v8 = vadd.f32 %v1028_v0, %v2270_v23  ;;  %v1093_v42 = vmax.f32 %v1027_v55, 0.0  ;;  %v2422_v57 = vpack.c.bf16 %v1090_v52, %v1088_v38  ;;  %v2430_v55 = vpack.c.bf16 %v1089_v20, %v1087_v40 }
 0x1bf   : > { %v1082_v0 = vmax.f32 %v999_v28, 0.0  ;;  %v2433_v54 = vpack.c.bf16 %v1086_v7, %v1084_v25  ;;  %v1078_v52 = vmax.f32 %v989_v50, 0.0  ;;  %v1074_v24 = vmax.f32 %v979_v3, 0.0 }
 0x1c0   : > { %v1094_v59 = vmax.f32 %v1029_v8, 0.0  ;;  %v2419_v23 = vpack.c.bf16 %v1093_v42, %v1091_v53  ;;  %v2638_v8 = vld [vmem:[#allocation17_spill] sm:$0xff]  ;;  %v1121_v42 = vpack.c.bf16 %v1085_v29, %v1083_v37  ;;  %v973_v41 = vadd.f32 %v2369_v35, %v2640_v30 }
 0x1c1   : > { %v985_v44 = vadd.f32 %v2397_v16, %v2638_v8  ;;  %v983_v60 = vadd.f32 %v2395_v13, %v2638_v8  ;;  %v975_v16 = vadd.f32 %v2377_v11, %v2640_v30  ;;  %v1073_v7 = vmax.f32 %v977_v49, 0.0  ;;  %v1631_v35 = vld [vmem:[%s2599_s3] ss:$8 sps:$4 sm:$0xff]  }
 0x1c2   : > { %v2416_v21 = vpack.c.bf16 %v1094_v59, %v1092_v48  ;;  %v1120_v48 = vpack.c.bf16 %v1082_v0, %v1080_v22  ;;  %v1079_v59 = vmax.f32 %v993_v31, 0.0  ;;  %v1071_v11 = vmax.f32 %v973_v41, 0.0 }
 0x1c3   : > { %v1076_v53 = vmax.f32 %v985_v44, 0.0  ;;  %v1075_v28 = vmax.f32 %v983_v60, 0.0  ;;  %v1072_v13 = vmax.f32 %v975_v16, 0.0 }
 0x1c4   : > { %1167 = vmatprep.subr.bf16.mxu1 %v2416_v21  ;;  %v1119_v38 = vpack.c.bf16 %v1081_v33, %v1079_v59  ;;  %v1115_v43 = vpack.c.bf16 %v1073_v7, %v1071_v11 }
 0x1c5   : > { %1168 = vmatpush2.bf16.msra.mxu1 %v2419_v23  ;;  %v1118_v20 = vpack.c.bf16 %v1078_v52, %v1076_v53  ;;  %v1117_v26 = vpack.c.bf16 %v1077_v6, %v1075_v28  ;;  %v1116_v40 = vpack.c.bf16 %v1074_v24, %v1072_v13 }
 0x1c6   : > { %1169 = vmatprep.subr.bf16.mxu1 %v2422_v57 }
 0x1c9   : > { %1170 = vmatpush2.bf16.msra.mxu1 %v2430_v55 }
 0x1ca   : > { %1171 = vmatprep.subr.bf16.mxu1 %v2433_v54 }
 0x1cd   : > { %1172 = vmatpush2.bf16.msra.mxu1 %v1121_v42 }
 0x1ce   : > { %1173 = vmatprep.subr.bf16.mxu1 %v1120_v48 }
 0x1d1   : > { %1174 = vmatpush2.bf16.msra.mxu1 %v1119_v38 }
 0x1d2   : > { %1175 = vmatprep.subr.bf16.mxu1 %v1118_v20 }
 0x1d5   : > { %1176 = vmatpush2.bf16.msra.mxu1 %v1117_v26 }
 0x1d6   : > { %1177 = vmatprep.subr.bf16.mxu1 %v1116_v40 }
 0x1d9   : > { %1178 = vmatpush2.bf16.msra.mxu1 %v1115_v43 }
 0x1da   : > { %1179 = vmatprep.subr.bf16.mxu1 %v2380_v19 }
 0x1dd   : > { %1180 = vmatpush2.bf16.msra.mxu1 %v2373_v10 }
 0x1de   : > { %1181 = vmatprep.subr.bf16.mxu1 %v2344_v63 }
 0x1e1   : > { %1182 = vmatpush2.bf16.msra.mxu1 %v2337_v36 }
 0x1e2   : > { %1218 = vmatprep.subr.bf16.mxu1 %v2317_v39 }
 0x1e4   : > { %1184 = vmatmul.mubr.bf16.vlgmr.msra.gmra.mxu1 %v1631_v35 }
 0x1e5   : > { %1219 = vmatpush1.bf16.msra.mxu1 %v2321_v5  ;;  %1250 = vmatprep.mubr.bf16.mxu1 %v1636_v61 }
 0x1e6   : > { %1220 = vmatprep.subr.bf16.mxu1 %v2323_v9  ;;  %v1139_v9 = vpop.permute.xlu1 %1138 }
 0x1e9   : > { %1221 = vmatpush1.bf16.msra.mxu1 %v2333_v27 }
 0x1ea   : > { %1222 = vmatprep.subr.bf16.mxu1 %v2335_v14 }
 0x1ed   : > { %1223 = vmatpush1.bf16.msra.mxu1 %v2352_v62 }
 0x1ee   : > { %1224 = vmatprep.subr.bf16.mxu1 %v2354_v58 }
 0x1f1   : > { %1225 = vmatpush1.bf16.msra.mxu1 %v2367_v17 }
 0x1f2   : > { %1226 = vmatprep.subr.bf16.mxu1 %v2371_v45 }
 0x1f5   : > { %1227 = vmatpush1.bf16.msra.mxu1 %v2383_v56 }
 0x1f6   : > { %1228 = vmatprep.subr.bf16.mxu1 %v2387_v12 }
 0x1f9   : > { %1229 = vmatpush1.bf16.msra.mxu1 %v2393_v47 }
 0x1fa   : > { %1230 = vmatprep.subr.bf16.mxu1 %v2260_v18 }
 0x1fd   : > { %1231 = vmatpush1.bf16.msra.mxu1 %v2256_v15 }
 0x1fe   : > { %1232 = vmatprep.subr.bf16.mxu1 %v2252_v4  ;;  %v1134_v4 = vpop.permute.xlu0 %1133 }
 0x201   : > { %1233 = vmatpush1.bf16.msra.mxu1 %v2250_v1  ;;  %v1634_v1 = vld [vmem:[%s2601_s5] ss:$8 sps:$4 sm:$0xff]  }
 0x202   : > { %1234 = vmatprep.subr.bf16.mxu1 %v2416_v21 }
 0x205   : > { %1235 = vmatpush2.bf16.msra.mxu1 %v2419_v23 }
 0x206   : > { %1236 = vmatprep.subr.bf16.mxu1 %v2422_v57 }
 0x209   : > { %1237 = vmatpush2.bf16.msra.mxu1 %v2430_v55 }
 0x20a   : > { %1238 = vmatprep.subr.bf16.mxu1 %v2433_v54 }
 0x20d   : > { %1239 = vmatpush2.bf16.msra.mxu1 %v1121_v42 }
 0x20e   : > { %1240 = vmatprep.subr.bf16.mxu1 %v1120_v48 }
 0x211   : > { %1241 = vmatpush2.bf16.msra.mxu1 %v1119_v38 }
 0x212   : > { %1242 = vmatprep.subr.bf16.mxu1 %v1118_v20 }
 0x215   : > { %1243 = vmatpush2.bf16.msra.mxu1 %v1117_v26 }
 0x216   : > { %1244 = vmatprep.subr.bf16.mxu1 %v1116_v40 }
 0x219   : > { %1245 = vmatpush2.bf16.msra.mxu1 %v1115_v43 }
 0x21a   : > { %1246 = vmatprep.subr.bf16.mxu1 %v2380_v19 }
 0x21d   : > { %1247 = vmatpush2.bf16.msra.mxu1 %v2373_v10 }
 0x21e   : > { %1248 = vmatprep.subr.bf16.mxu1 %v2344_v63 }
 0x221   : > { %1249 = vmatpush2.bf16.msra.mxu1 %v2337_v36 }
 0x224   : > { %1251 = vmatmul.mubr.bf16.vlgmr.msra.gmra.mxu1 %v1634_v1 }
 0x2a4   : > { %v1185_v15 = vpop.f32.mrf.mxu1 }
 0x2a5   : > { %v1186_v18 = vadd.f32 %v1185_v15, %v1134_v4 }
 0x2a6   : > { %v1187_v39 = vpop.f32.mrf.mxu1 }
 0x2a7   : > { %1261 = vst [vmem:[%s347_s7] sm:$0xff] %v1186_v18  ;;  %v1188_v5 = vadd.f32 %v1187_v39, %v1134_v4 }
 0x2a8   : > { %v1189_v27 = vpop.f32.mrf.mxu1 }
 0x2a9   : > { %1262 = vst [vmem:[%s347_s7 + $0x8] sm:$0xff] %v1188_v5  ;;  %v1190_v14 = vadd.f32 %v1189_v27, %v1139_v9 }
 0x2aa   : > { %v1191_v36 = vpop.f32.mrf.mxu1 }
 0x2ab   : > { %1263 = vst [vmem:[%s347_s7 + $0x10] sm:$0xff] %v1190_v14  ;;  %v1192_v63 = vadd.f32 %v1191_v36, %v1139_v9 }
 0x2ad   : > { %1264 = vst [vmem:[%s347_s7 + $0x18] sm:$0xff] %v1192_v63 }
 0x2ae   : > { %1678 = shalt.err (!%p1675_p3)
}
 0x2af   : > { %s1679_s18 = scalar_lea.hbm %s2505_s17, 512  ;;  %s1683_s30 = scalar_lea.hbm %s2642_s23, 2048 }
 0x2b0   : > { %p1680_p7 = scmp.ne.s32.totalorder %s2505_s17, %s1679_s18  ;;  %p1684_p13 = scmp.lt.s32.totalorder %s2505_s17, %s2642_s23 }
 0x2b1   : > { %p1685_p2 = scmp.lt.s32.totalorder %s1683_s30, %s1679_s18 }
 0x2b2   : > { %p1681_p10 = pnand %p1680_p7, %p1913_p9 }
 0x2b3   : > { %p1686_p8 = por %p1685_p2, %p1684_p13 }
 0x2b4   : > { %p1682_p11 = pneg %p1681_p10 }
 0x2b6   : > { %p1687_p0 = pnand %p1686_p8, %p1682_p11 }
 0x2b8   : > { %1690 = shalt.err (!%p1687_p0)
}
 0x2b9   : > { %s2618_s27 = smov 256   ;;  %s1800_s19 = smov 512   ;;  %v1201_v62 = vpop.permute.xlu0 %1200  ;;  %v1206_v19 = vpop.permute.xlu1 %1205 }
 0x2ba   : > { %s1801_s16 = smov 16   ;;  %s354_s18 = scalar_lea.vmem [#allocation6], %s1443_s21 }
 0x2bb   : > { %1493 = dma.vmem_to_hbm [thread:$0]  (%p1913_p9), %s2498_s20, 512, %s2505_s17, %s1270_s8, %s2618_s27, %s1800_s19, %s1801_s16  }
 0x2bc   : > { %s1308_s11 = sshll.u32 %s354_s18, 4  ;;  %s2643_s21 = sld [smem:[#allocation22_spill]]  ;;  %s2535_s11 = int_to_ptr.vmem [resolvable:$true] %s1308_s11 }
 0x2bd   : > { %s1275_s7 = scalar_lea.sflag [#allocation7], %s1948_s25  ;;  %s1691_s30 = scalar_lea.vmem %s2535_s11, 512 }
 0x2be   : > { %p1692_p1 = scmp.ne.s32.totalorder %s2535_s11, %s1691_s30  ;;  %s1802_s9 = smov [#allocation6]  }
 0x2bf   : > { %s1695_s15 = sshll.u32 %s1802_s9, 4  ;;  %s1696_s15 = int_to_ptr.vmem [resolvable:$false] %s1695_s15 }
 0x2c0   : > { %p1693_p4 = pnand %p1692_p1, %p1913_p9  ;;  %s1697_s27 = scalar_lea.vmem %s1696_s15, 1024 }
 0x2c1   : > { %p1698_p6 = scmp.lt.s32.totalorder %s2535_s11, %s1696_s15  ;;  %p1699_p3 = scmp.lt.s32.totalorder %s1697_s27, %s1691_s30 }
 0x2c2   : > { %s2542_s8 = scalar_lea.hbm %s2643_s21, %s1485_s22  ;;  %p1694_p5 = pneg %p1693_p4 }
 0x2c3   : > { %p1700_p7 = por %p1699_p3, %p1698_p6 }
 0x2c5   : > { %p1701_p10 = pnand %p1700_p7, %p1694_p5 }
 0x2e4   : > { %v1252_v58 = vpop.f32.mrf.mxu1 }
 0x2e5   : > { %v1253_v17 = vadd.f32 %v1252_v58, %v1201_v62 }
 0x2e6   : > { %v1254_v45 = vpop.f32.mrf.mxu1 }
 0x2e7   : > { %1265 = vst [vmem:[%s354_s18] sm:$0xff] %v1253_v17  ;;  %v1255_v10 = vadd.f32 %v1254_v45, %v1201_v62 }
 0x2e8   : > { %v1256_v56 = vpop.f32.mrf.mxu1 }
 0x2e9   : > { %1266 = vst [vmem:[%s354_s18 + $0x8] sm:$0xff] %v1255_v10  ;;  %v1257_v12 = vadd.f32 %v1256_v56, %v1206_v19 }
 0x2ea   : > { %v1258_v47 = vpop.f32.mrf.mxu1 }
 0x2eb   : > { %1267 = vst [vmem:[%s354_s18 + $0x10] sm:$0xff] %v1257_v12  ;;  %v1259_v21 = vadd.f32 %v1258_v47, %v1206_v19 }
 0x2ed   : > { %1268 = vst [vmem:[%s354_s18 + $0x18] sm:$0xff] %v1259_v21 }
 0x2ee   : > { %1704 = shalt.err (!%p1701_p10)
}
 0x2ef   : > { %s1705_s13 = scalar_lea.hbm %s2542_s8, 512  ;;  %s1709_s18 = scalar_lea.hbm %s2643_s21, 2048 }
 0x2f0   : > { %p1706_p11 = scmp.ne.s32.totalorder %s2542_s8, %s1705_s13  ;;  %p1710_p8 = scmp.lt.s32.totalorder %s2542_s8, %s2643_s21 }
 0x2f1   : > { %p1711_p0 = scmp.lt.s32.totalorder %s1709_s18, %s1705_s13 }
 0x2f2   : > { %p1707_p13 = pnand %p1706_p11, %p1913_p9 }
 0x2f3   : > { %p1712_p1 = por %p1711_p0, %p1710_p8 }
 0x2f4   : > { %p1708_p2 = pneg %p1707_p13 }
 0x2f6   : > { %p1713_p4 = pnand %p1712_p1, %p1708_p2 }
 0x2f8   : > { %1716 = shalt.err (!%p1713_p4)
}
 0x2f9   : > { %s2644_s27 = smov 256  }
 0x2fa   : > { %1494 = dma.vmem_to_hbm [thread:$0]  (%p1913_p9), %s2535_s11, 512, %s2542_s8, %s1275_s7, %s2644_s27, %s1800_s19, %s1801_s16  }
 0x2fb PF: > { %s2645_s30 = sld [smem:[#allocation11_spill]]  ;;  %p1509_p5 = scmp.ge.s32.totalorder %s1791_s12, 2 }
 0x2fd   : > { %p1502_p6 = pnand %p1509_p5, %p1919_p12 }
 0x2ff   : > { %p1503_p3 = pneg %p1502_p6 }
 0x301   : > { %s1323_s9 = sand.u32 1, %s2645_s30  }
 0x302   : > { %s1324_s15 = scalar_lea.sflag [#allocation4], %s1323_s9 }
 0x303   : > { %1754 = dma.done.wait (%p1503_p3), %s1324_s15, 512  }
 0x304   : > { %1756 = vsyncadd (%p1503_p3), %s1324_s15, 4294966784  ;;  %s1333_s13 = scalar_lea.sflag [#allocation7], %s1323_s9 }
 0x305   : > { %1758 = dma.done.wait (%p1503_p3), %s1333_s13, 512  }
 0x306   : > { %1760 = vsyncadd (%p1503_p3), %s1333_s13, 4294966784  ;;  %s28_s12 = sadd.s32 1, %s1791_s12   ;;  %s2646_s9 = sld [smem:[#allocation12_spill]] }
 0x307   : > { %p25_p7 = scmp.ge.s32.totalorder %s28_s12, 6   ;;  %s2647_s14 = sld [smem:[#allocation13_spill]] }
 0x308   : > { %s2648_s11 = sld [smem:[#allocation14_spill]]  ;;  %s2649_s27 = smov %s1767_s28 }
 0x309   : > { %s2650_s28 = smov %s1771_s29  ;;  %s2651_s29 = smov %s1926_s26 }
 0x30a   : > { %s2652_s30 = smov %s1783_s10  ;;  %27 = sbr.rel (!%p25_p7) target bundleno = 12 (0xc), region = 110 }
 0x30d   : > { %s2653_s10 = smov %s2647_s14 }
 0x30f   :  { %1338 = vsyncpa [#allocation3], 1 }
 0x310   :  { %1340 = vsyncpa [#allocation3 + $0x1], 1 }
 0x311   :  { %1341 = vsyncpa [#allocation4], 1 }
 0x312   :  { %1343 = vsyncpa [#allocation4 + $0x1], 1 }
 0x313   :  { %1344 = vsyncpa [#allocation7], 1 }
 0x314   :  { %1346 = vsyncpa [#allocation7 + $0x1], 1 }

// kernel: tpu_custom_call.1
= control target key start
LH: loop header
LB: loop body
LE: loop exit
PB: predicated region body
PF: predicated region fallthrough
CT: control target
= control target key end

     0   :  { %s2596_s0 = inlined_call_operand.hbm [shape: f32[2,256,512], index: 0, kind: input, shape index: {}]   ;;  %s2597_s1 = inlined_call_operand.vmem [shape: bf16[256,256], index: 1, kind: input, shape index: {}]   ;;  %s2598_s2 = inlined_call_operand.vmem [shape: f32[256,1], index: 2, kind: input, shape index: {}]   ;;  %s2599_s3 = inlined_call_operand.vmem [shape: bf16[16,256], index: 3, kind: input, shape index: {}]   ;;  %s2600_s4 = inlined_call_operand.vmem [shape: f32[16,1], index: 4, kind: input, shape index: {}]   ;;  %s2601_s5 = inlined_call_operand.vmem [shape: bf16[16,256], index: 5, kind: input, shape index: {}]   ;;  %s2602_s6 = inlined_call_operand.vmem [shape: f32[16,1], index: 6, kind: input, shape index: {}]   ;;  %s2603_s7 = inlined_call_operand.hbm [shape: f32[2,16,512], index: 7, kind: output, shape index: {0}]   ;;  %s2604_s8 = inlined_call_operand.hbm [shape: f32[2,16,512], index: 8, kind: output, shape index: {1}]  }
   0x1   :  { %2619 = sst [smem:[#allocation21_spill]] %s2603_s7 }
   0x2   :  { %2620 = sst [smem:[#allocation22_spill]] %s2604_s8 }
   0x3   :  { %14 = vsyncpa [#allocation3], 0 }
   0x4   :  { %16 = vsyncpa [#allocation3 + $0x1], 0 }
   0x5   :  { %17 = vsyncpa [#allocation4], 0 }
   0x6   :  { %19 = vsyncpa [#allocation4 + $0x1], 0 }
   0x7   :  { %20 = vsyncpa [#allocation7], 0 }
   0x8   :  { %22 = vsyncpa [#allocation7 + $0x1], 0  ;;  %s1848_s27 = smov 0   ;;  %s1850_s28 = smov 0  }
   0x9   :  { %s1852_s29 = smov 0   ;;  %s1854_s30 = smov 0  }
   0xa   :  { %s1856_s9 = smov 0   ;;  %s1858_s10 = smov 0  }
   0xb   :  { %s1860_s11 = smov 0   ;;  %s1862_s12 = smov 0  }
   0xc LB: > { %2621 = sst [smem:[#allocation11_spill]] %s1763_s27  ;;  %s1433_s13 = sadd.s32 4294967295, %s1791_s12   ;;  %s1791_s12 = sphi %s1862_s12, %s28_s12   ;;  %s1787_s11 = sphi %s1860_s11, %s2648_s11   ;;  %s1783_s10 = sphi %s1858_s10, %s2653_s10   ;;  %s1779_s9 = sphi %s1856_s9, %s2646_s9   ;;  %s1775_s30 = sphi %s1854_s30, %s2652_s30   ;;  %s1771_s29 = sphi %s1852_s29, %s2651_s29   ;;  %s1767_s28 = sphi %s1850_s28, %s2650_s28   ;;  %s1763_s27 = sphi %s1848_s27, %s2649_s27  }
   0xd   : > { %2622 = sst [smem:[#allocation12_spill]] %s1787_s11  ;;  %s1434_s14 = sadd.s32 4294967294, %s1791_s12  }
   0xe   : > { %s37_s15 = sadd.s32 1, %s1783_s10  ;;  %s40_s16 = sadd.s32 1, %s1787_s11 }
   0xf   : > { %p38_p0 = scmp.ge.s32.totalorder %s37_s15, 2  ;;  %s49_s17 = sadd.s32 1, %s1771_s29 }
  0x10   : > { %p56_p1 = scmp.ne.s32.totalorder %s1771_s29, %s1767_s28  ;;  %p57_p2 = scmp.eq.s32.totalorder %s1791_s12, 0 }
  0x11   : > { %s2655_s15 = smov (%p38_p0, %s37_s15), 0  ;;  %s2657_s16 = smov (!%p38_p0, %s40_s16), %s1787_s11 }
  0x12   : > { %2623 = sst [smem:[#allocation13_spill]] %s2655_s15  ;;  %s45_s18 = ssub.s32 %s1783_s10, %s2655_s15 }
  0x13   : > { %p1901_p3 = por %p57_p2, %p56_p1  ;;  %p42_p4 = scmp.ge.s32.totalorder %s2657_s16, 2 }
  0x14   : > { %p62_p5 = scmp.ne.s32.totalorder %s1767_s28, %s1763_s27  ;;  %p63_p6 = scmp.eq.s32.totalorder %s1433_s13, 0 }
  0x15   : > { %p214_p7 = scmp.eq.s32.totalorder %s1433_s13, 3  ;;  %s2659_s16 = smov (%p42_p4, %s2657_s16), 0 }
  0x16   : > { %2625 = sst [smem:[#allocation14_spill]] %s2659_s16  ;;  %p1909_p8 = por %p63_p6, %p62_p5 }
  0x17   : > { %p1913_p9 = por %p214_p7, %p56_p1  ;;  %s44_s22 = ssub.s32 %s1787_s11, %s2659_s16 }
  0x18   : > { %p220_p10 = scmp.eq.s32.totalorder %s1434_s14, 3  ;;  %s46_s23 = sor.u32 %s45_s18, %s44_s22 }
  0x19   : > { %s2627_s21 = scalar_select %p1913_p9, 1, 0 }
  0x1a   : > { %p47_p11 = scmp.eq.s32.totalorder %s46_s23, 0  ;;  %p1919_p12 = por %p220_p10, %p62_p5 }
  0x1b   : > { %2628 = sst [smem:[#allocation15_spill]] %s2627_s21  ;;  %p1508_p13 = scmp.lt.s32.totalorder %s1791_s12, 4 }
  0x1c   : > { %s286_s25 = sand.u32 1, %s1771_s29   ;;  %s1438_s15 = sshll.u32 %s1783_s10, 1 }
  0x1d   : > { %s1926_s26 = scalar_select %p47_p11, %s1771_s29, %s49_s17  }
  0x1e   : > { %s1437_s13 = sshll.u32 %s286_s25, 9  ;;  %s1439_s27 = sshll.u32 %s1787_s11, 7 }
  0x1f   : > { %s290_s8 = scalar_lea.vmem [#allocation2], %s1437_s13  ;;  %s296_s21 = sadd.s32 %s1439_s27, %s1438_s15 }
  0x20   : > { %s299_s7 = sshll.u32 %s290_s8, 4  ;;  %s1440_s16 = sshll.u32 %s296_s21, 7  ;;  %s300_s7 = int_to_ptr.vmem [resolvable:$true] %s299_s7 }
  0x21   : > { %p1932_p0 = pnand %p1508_p13, %p1901_p3  ;;  %s298_s23 = scalar_lea.hbm %s2596_s0, %s1440_s16 }
  0x22   : > { %p1441_p1 = scmp.ge.s32.totalorder %s1791_s12, 1  ;;  %s287_s17 = scalar_lea.sflag [#allocation3], %s286_s25 }
  0x23   : > { %p1639_p2 = pneg %p1932_p0  ;;  %s1650_s11 = scalar_lea.vmem %s300_s7, 8192 }
  0x24   : > { %p1651_p4 = scmp.ne.s32.totalorder %s300_s7, %s1650_s11  ;;  %s1793_s8 = smov [#allocation2]  }
  0x25   : > { %s1655_s27 = sshll.u32 %s1793_s8, 4  ;;  %s1656_s27 = int_to_ptr.vmem [resolvable:$false] %s1655_s27 }
  0x26   : > { %p1653_p5 = pnand %p1651_p4, %p1639_p2  ;;  %s1657_s15 = scalar_lea.vmem %s1656_s27, 16384 }
  0x27   : > { %p1658_p3 = scmp.lt.s32.totalorder %s300_s7, %s1656_s27  ;;  %p1659_p7 = scmp.lt.s32.totalorder %s1657_s15, %s1650_s11 }
  0x28   : > { %p1654_p6 = pneg %p1653_p5 }
  0x29   : > { %p1660_p10 = por %p1659_p7, %p1658_p3 }
  0x2b   : > { %p1661_p11 = pnand %p1660_p10, %p1654_p6 }
  0x2d   : > { %1664 = shalt.err (!%p1661_p11)
}
  0x2e   : > { %s1794_s19 = smov 512   ;;  %s1795_s16 = smov 256  }
  0x2f   : > { %s1796_s21 = smov 16   ;;  %p307_p13 = scmp.lt.s32.totalorder %s1791_s12, 5 }
  0x30   : > { %1500 = dma.hbm_to_vmem [thread:$0]  (!%p1932_p0), %s298_s23, 8192, %s300_s7, %s287_s17, %s1794_s19, %s1795_s16, %s1796_s21  }
  0x31   : > { %p308_p2 = pnand %p1441_p1, %p307_p13 }
  0x33   : > { %311 = sbr.rel (%p308_p2) target bundleno = 763 (0x2fb), region = 48 }
  0x38   : > { %s1948_s25 = sand.u32 1, %s1767_s28  }
  0x39   : > { %s1442_s11 = sshll.u32 %s1948_s25, 9  ;;  %s314_s13 = scalar_lea.sflag [#allocation3], %s1948_s25 }
  0x3a   : > { %s1952_s18 = scalar_lea.vmem [#allocation2], %s1442_s11 }
  0x3b   : > { %1750 = dma.done.wait (%p1909_p8), %s314_s13, 8192  }
  0x3c   : > { %1752 = vsyncadd (%p1909_p8), %s314_s13, 4294959104  ;;  %v1797_v0 = vmov 0   ;;  %v387_v1 = vld [vmem:[%s1952_s18 + $0xe8] sm:$0xff]  ;;  %v389_v2 = vld [vmem:[%s1952_s18 + $0xf8] sm:$0xff]  ;;  %s1443_s21 = sshll.u32 %s1948_s25, 5  ;;  %s1484_s11 = sshll.u32 %s1779_s9, 3 }
  0x3d   : > { %1581 = vset.pattern.permute.xlu0 %v1797_v0  ;;  %1582 = vset.pattern.permute.xlu1 %v1797_v0  ;;  %v386_v3 = vld [vmem:[%s1952_s18 + $0xe0] sm:$0xff]  ;;  %v437_v4 = vpack.c.bf16 %v389_v2, %v387_v1  ;;  %v388_v5 = vld [vmem:[%s1952_s18 + $0xf0] sm:$0xff]  ;;  %v383_v6 = vld [vmem:[%s1952_s18 + $0xc8] sm:$0xff]  ;;  %s347_s7 = scalar_lea.vmem [#allocation5], %s1443_s21  ;;  %s2642_s23 = sld [smem:[#allocation21_spill]] }
  0x3e   : > { %v385_v7 = vld [vmem:[%s1952_s18 + $0xd8] sm:$0xff]  ;;  %v436_v8 = vpack.c.bf16 %v388_v5, %v386_v3  ;;  %v382_v10 = vld [vmem:[%s1952_s18 + $0xc0] sm:$0xff]  ;;  %v384_v11 = vld [vmem:[%s1952_s18 + $0xd0] sm:$0xff]  ;;  %s1290_s20 = sshll.u32 %s347_s7, 4  ;;  %s1270_s8 = scalar_lea.sflag [#allocation4], %s1948_s25  ;;  %s2498_s20 = int_to_ptr.vmem [resolvable:$true] %s1290_s20 }
  0x3f   : > { %v435_v9 = vpack.c.bf16 %v385_v7, %v383_v6  ;;  %v379_v12 = vld [vmem:[%s1952_s18 + $0xa8] sm:$0xff]  ;;  %838 = vmatprep.subr.bf16.mxu0 %v437_v4  ;;  %v381_v13 = vld [vmem:[%s1952_s18 + $0xb8] sm:$0xff]  ;;  %v434_v14 = vpack.c.bf16 %v384_v11, %v382_v10  ;;  %v378_v16 = vld [vmem:[%s1952_s18 + $0xa0] sm:$0xff]  ;;  %s1665_s27 = scalar_lea.vmem %s2498_s20, 512  ;;  %s1798_s15 = smov [#allocation5]  }
  0x40   : > { %839 = vmatpush1.bf16.msra.mxu0 %v436_v8  ;;  %v433_v15 = vpack.c.bf16 %v381_v13, %v379_v12  ;;  %v380_v17 = vld [vmem:[%s1952_s18 + $0xb0] sm:$0xff]  ;;  %v375_v18 = vld [vmem:[%s1952_s18 + $0x88] sm:$0xff]  ;;  %v377_v19 = vld [vmem:[%s1952_s18 + $0x98] sm:$0xff]  ;;  %p1666_p8 = scmp.ne.s32.totalorder %s2498_s20, %s1665_s27  ;;  %s1669_s19 = sshll.u32 %s1798_s15, 4  ;;  %s1670_s19 = int_to_ptr.vmem [resolvable:$false] %s1669_s19 }
  0x41   : > { %840 = vmatprep.subr.bf16.mxu0 %v435_v9  ;;  %v432_v20 = vpack.c.bf16 %v380_v17, %v378_v16  ;;  %v431_v21 = vpack.c.bf16 %v377_v19, %v375_v18  ;;  %v374_v22 = vld [vmem:[%s1952_s18 + $0x80] sm:$0xff]  ;;  %v376_v23 = vld [vmem:[%s1952_s18 + $0x90] sm:$0xff]  ;;  %v371_v24 = vld [vmem:[%s1952_s18 + $0x68] sm:$0xff]  ;;  %s1671_s16 = scalar_lea.vmem %s1670_s19, 1024  ;;  %p1672_p4 = scmp.lt.s32.totalorder %s2498_s20, %s1670_s19 }
  0x42   : > { %v373_v25 = vld [vmem:[%s1952_s18 + $0x78] sm:$0xff]  ;;  %v430_v26 = vpack.c.bf16 %v376_v23, %v374_v22  ;;  %v370_v28 = vld [vmem:[%s1952_s18 + $0x60] sm:$0xff]  ;;  %v372_v29 = vld [vmem:[%s1952_s18 + $0x70] sm:$0xff]  ;;  %p1667_p0 = pnand %p1666_p8, %p1913_p9  ;;  %p1673_p5 = scmp.lt.s32.totalorder %s1671_s16, %s1665_s27 }
  0x43   : > { %v429_v27 = vpack.c.bf16 %v373_v25, %v371_v24  ;;  %v367_v30 = vld [vmem:[%s1952_s18 + $0x48] sm:$0xff]  ;;  %v369_v31 = vld [vmem:[%s1952_s18 + $0x58] sm:$0xff]  ;;  %v428_v32 = vpack.c.bf16 %v372_v29, %v370_v28  ;;  %v366_v34 = vld [vmem:[%s1952_s18 + $0x40] sm:$0xff] }
  0x44   : > { %841 = vmatpush1.bf16.msra.mxu0 %v434_v14  ;;  %v427_v33 = vpack.c.bf16 %v369_v31, %v367_v30  ;;  %v368_v35 = vld [vmem:[%s1952_s18 + $0x50] sm:$0xff]  ;;  %v363_v36 = vld [vmem:[%s1952_s18 + $0x28] sm:$0xff]  ;;  %v365_v37 = vld [vmem:[%s1952_s18 + $0x38] sm:$0xff]  ;;  %p1668_p1 = pneg %p1667_p0  ;;  %p1674_p6 = por %p1673_p5, %p1672_p4 }
  0x45   : > { %842 = vmatprep.subr.bf16.mxu0 %v433_v15  ;;  %v426_v38 = vpack.c.bf16 %v368_v35, %v366_v34  ;;  %v362_v39 = vld [vmem:[%s1952_s18 + $0x20] sm:$0xff]  ;;  %v364_v40 = vld [vmem:[%s1952_s18 + $0x30] sm:$0xff]  ;;  %v425_v41 = vpack.c.bf16 %v365_v37, %v363_v36  ;;  %v359_v42 = vld [vmem:[%s1952_s18 + $0x8] sm:$0xff] }
  0x46   : > { %v361_v43 = vld [vmem:[%s1952_s18 + $0x18] sm:$0xff]  ;;  %v1585_v44 = vld [vmem:[%s2597_s1 + $0x4] ss:$8 sps:$4 sm:$0xff]   ;;  %v424_v45 = vpack.c.bf16 %v364_v40, %v362_v39  ;;  %v360_v48 = vld [vmem:[%s1952_s18 + $0x10] sm:$0xff]  ;;  %p1675_p3 = pnand %p1674_p6, %p1668_p1 }
  0x47   : > { %v358_v46 = vld [vmem:[%s1952_s18] sm:$0xff]  ;;  %870 = vmatprep.mubr.bf16.mxu0 %v1585_v44  ;;  %v423_v47 = vpack.c.bf16 %v361_v43, %v359_v42  ;;  %v419_v49 = vld [vmem:[%s1952_s18 + $0x1e8] sm:$0xff]  ;;  %v421_v50 = vld [vmem:[%s1952_s18 + $0x1f8] sm:$0xff] }
  0x48   : > { %843 = vmatpush1.bf16.msra.mxu0 %v432_v20  ;;  %v418_v51 = vld [vmem:[%s1952_s18 + $0x1e0] sm:$0xff]  ;;  %v422_v52 = vpack.c.bf16 %v360_v48, %v358_v46  ;;  %v420_v53 = vld [vmem:[%s1952_s18 + $0x1f0] sm:$0xff]  ;;  %v453_v54 = vpack.c.bf16 %v421_v50, %v419_v49  ;;  %v415_v55 = vld [vmem:[%s1952_s18 + $0x1c8] sm:$0xff] }
  0x49   : > { %844 = vmatprep.subr.bf16.mxu0 %v431_v21  ;;  %v417_v56 = vld [vmem:[%s1952_s18 + $0x1d8] sm:$0xff]  ;;  %v500_v57 = vld [vmem:[%s2598_s2 + $0x70] sm:$0xff]  ;;  %v498_v58 = vld [vmem:[%s2598_s2 + $0x60] sm:$0xff]  ;;  %v452_v60 = vpack.c.bf16 %v420_v53, %v418_v51 }
  0x4a   : > { %590 = vperm.xlu0 %1581, %v500_v57   ;;  %v501_v59 = vld [vmem:[%s2598_s2 + $0x78] sm:$0xff]  ;;  %580 = vperm.xlu1 %1582, %v498_v58   ;;  %v414_v61 = vld [vmem:[%s1952_s18 + $0x1c0] sm:$0xff]  ;;  %v499_v62 = vld [vmem:[%s2598_s2 + $0x68] sm:$0xff]  ;;  %v451_v63 = vpack.c.bf16 %v417_v56, %v415_v55 }
  0x4b   : > { %v416_v0 = vld [vmem:[%s1952_s18 + $0x1d0] sm:$0xff]  ;;  %v411_v1 = vld [vmem:[%s1952_s18 + $0x1a8] sm:$0xff]  ;;  %v413_v2 = vld [vmem:[%s1952_s18 + $0x1b8] sm:$0xff] }
  0x4c   : > { %845 = vmatpush1.bf16.msra.mxu0 %v430_v26  ;;  %v496_v3 = vld [vmem:[%s2598_s2 + $0x50] sm:$0xff]  ;;  %v450_v4 = vpack.c.bf16 %v416_v0, %v414_v61  ;;  %v497_v5 = vld [vmem:[%s2598_s2 + $0x58] sm:$0xff]  ;;  %v449_v6 = vpack.c.bf16 %v413_v2, %v411_v1  ;;  %v410_v7 = vld [vmem:[%s1952_s18 + $0x1a0] sm:$0xff] }
  0x4d   : > { %846 = vmatprep.subr.bf16.mxu0 %v429_v27  ;;  %v412_v8 = vld [vmem:[%s1952_s18 + $0x1b0] sm:$0xff]  ;;  %v407_v9 = vld [vmem:[%s1952_s18 + $0x188] sm:$0xff]  ;;  %v409_v10 = vld [vmem:[%s1952_s18 + $0x198] sm:$0xff] }
  0x4e   : > { %595 = vperm.xlu0 %1581, %v501_v59   ;;  %585 = vperm.xlu1 %1582, %v499_v62   ;;  %v406_v11 = vld [vmem:[%s1952_s18 + $0x180] sm:$0xff]  ;;  %v448_v13 = vpack.c.bf16 %v412_v8, %v410_v7  ;;  %v495_v14 = vld [vmem:[%s2598_s2 + $0x48] sm:$0xff]  ;;  %v447_v15 = vpack.c.bf16 %v409_v10, %v407_v9  ;;  %v408_v16 = vld [vmem:[%s1952_s18 + $0x190] sm:$0xff] }
  0x4f   : > { %v494_v12 = vld [vmem:[%s2598_s2 + $0x40] sm:$0xff]  ;;  %v403_v17 = vld [vmem:[%s1952_s18 + $0x168] sm:$0xff]  ;;  %v405_v18 = vld [vmem:[%s1952_s18 + $0x178] sm:$0xff]  ;;  %v446_v20 = vpack.c.bf16 %v408_v16, %v406_v11 }
  0x50   : > { %847 = vmatpush1.bf16.msra.mxu0 %v428_v32  ;;  %v492_v19 = vld [vmem:[%s2598_s2 + $0x30] sm:$0xff]  ;;  %v493_v21 = vld [vmem:[%s2598_s2 + $0x38] sm:$0xff]  ;;  %v445_v22 = vpack.c.bf16 %v405_v18, %v403_v17  ;;  %v402_v23 = vld [vmem:[%s1952_s18 + $0x160] sm:$0xff] }
  0x51   : > { %848 = vmatprep.subr.bf16.mxu0 %v427_v33  ;;  %v404_v24 = vld [vmem:[%s1952_s18 + $0x170] sm:$0xff]  ;;  %v399_v25 = vld [vmem:[%s1952_s18 + $0x148] sm:$0xff]  ;;  %v401_v26 = vld [vmem:[%s1952_s18 + $0x158] sm:$0xff] }
  0x52   : > { %570 = vperm.xlu0 %1581, %v496_v3   ;;  %575 = vperm.xlu1 %1582, %v497_v5   ;;  %v398_v27 = vld [vmem:[%s1952_s18 + $0x140] sm:$0xff]  ;;  %v491_v29 = vld [vmem:[%s2598_s2 + $0x28] sm:$0xff]  ;;  %v444_v30 = vpack.c.bf16 %v404_v24, %v402_v23  ;;  %v443_v31 = vpack.c.bf16 %v401_v26, %v399_v25  ;;  %v400_v32 = vld [vmem:[%s1952_s18 + $0x150] sm:$0xff] }
  0x53   : > { %v490_v28 = vld [vmem:[%s2598_s2 + $0x20] sm:$0xff]  ;;  %v395_v33 = vld [vmem:[%s1952_s18 + $0x128] sm:$0xff]  ;;  %v397_v34 = vld [vmem:[%s1952_s18 + $0x138] sm:$0xff]  ;;  %v442_v36 = vpack.c.bf16 %v400_v32, %v398_v27 }
  0x54   : > { %849 = vmatpush1.bf16.msra.mxu0 %v426_v38  ;;  %v488_v35 = vld [vmem:[%s2598_s2 + $0x10] sm:$0xff]  ;;  %v489_v37 = vld [vmem:[%s2598_s2 + $0x18] sm:$0xff]  ;;  %v441_v38 = vpack.c.bf16 %v397_v34, %v395_v33  ;;  %v394_v39 = vld [vmem:[%s1952_s18 + $0x120] sm:$0xff] }
  0x55   : > { %850 = vmatprep.subr.bf16.mxu0 %v425_v41  ;;  %v396_v40 = vld [vmem:[%s1952_s18 + $0x130] sm:$0xff]  ;;  %v391_v41 = vld [vmem:[%s1952_s18 + $0x108] sm:$0xff]  ;;  %v393_v42 = vld [vmem:[%s1952_s18 + $0x118] sm:$0xff] }
  0x56   : > { %560 = vperm.xlu0 %1581, %v494_v12   ;;  %565 = vperm.xlu1 %1582, %v495_v14   ;;  %v486_v43 = vld [vmem:[%s2598_s2] sm:$0xff]  ;;  %v440_v44 = vpack.c.bf16 %v396_v40, %v394_v39  ;;  %v439_v46 = vpack.c.bf16 %v393_v42, %v391_v41  ;;  %v392_v48 = vld [vmem:[%s1952_s18 + $0x110] sm:$0xff]  ;;  %v517_v51 = vld [vmem:[%s2598_s2 + $0xf8] sm:$0xff] }
  0x57   : > { %v516_v49 = vld [vmem:[%s2598_s2 + $0xf0] sm:$0xff]  ;;  %v514_v53 = vld [vmem:[%s2598_s2 + $0xe0] sm:$0xff]  ;;  %v515_v55 = vld [vmem:[%s2598_s2 + $0xe8] sm:$0xff] }
  0x58   : > { %851 = vmatpush1.bf16.msra.mxu0 %v424_v45  ;;  %v487_v45 = vld [vmem:[%s2598_s2 + $0x8] sm:$0xff]  ;;  %v512_v56 = vld [vmem:[%s2598_s2 + $0xd0] sm:$0xff]  ;;  %v513_v57 = vld [vmem:[%s2598_s2 + $0xd8] sm:$0xff] }
  0x59   : > { %852 = vmatprep.subr.bf16.mxu0 %v423_v47  ;;  %v390_v47 = vld [vmem:[%s1952_s18 + $0x100] sm:$0xff]  ;;  %v1588_v58 = vld [vmem:[%s2597_s1 + $0x10] ss:$8 sps:$4 sm:$0xff]   ;;  %v511_v61 = vld [vmem:[%s2598_s2 + $0xc8] sm:$0xff]  ;;  %s1483_s18 = sshll.u32 %s1775_s30, 1 }
  0x5a   : > { %550 = vperm.xlu0 %1581, %v492_v19   ;;  %555 = vperm.xlu1 %1582, %v493_v21   ;;  %v438_v50 = vpack.c.bf16 %v392_v48, %v390_v47  ;;  %v510_v59 = vld [vmem:[%s2598_s2 + $0xc0] sm:$0xff]  ;;  %v508_v62 = vld [vmem:[%s2598_s2 + $0xb0] sm:$0xff]  ;;  %v507_v3 = vld [vmem:[%s2598_s2 + $0xa8] sm:$0xff]  ;;  %s2493_s13 = sadd.s32 %s1484_s11, %s1483_s18 }
  0x5b   : > { %v1591_v0 = vld [vmem:[%s2597_s1 + $0x20] ss:$8 sps:$4 sm:$0xff]   ;;  %v1592_v2 = vld [vmem:[%s2597_s1 + $0x34] ss:$8 sps:$4 sm:$0xff]   ;;  %v1595_v8 = vld [vmem:[%s2597_s1 + $0x44] ss:$8 sps:$4 sm:$0xff]  }
  0x5c   : > { %853 = vmatpush1.bf16.msra.mxu0 %v422_v52  ;;  %v1583_v52 = vld [vmem:[%s2597_s1] ss:$8 sps:$4 sm:$0xff]   ;;  %v505_v5 = vld [vmem:[%s2598_s2 + $0x98] sm:$0xff]  ;;  %v1601_v17 = vld [vmem:[%s2597_s1 + $0x64] ss:$8 sps:$4 sm:$0xff]   ;;  %s1485_s22 = sshll.u32 %s2493_s13, 7 }
  0x5d   : > { %854 = vmatprep.subr.bf16.mxu0 %v453_v54  ;;  %v1586_v54 = vld [vmem:[%s2597_s1 + $0x14] ss:$8 sps:$4 sm:$0xff]   ;;  %v506_v1 = vld [vmem:[%s2598_s2 + $0xa0] sm:$0xff]  ;;  %v503_v9 = vld [vmem:[%s2598_s2 + $0x88] sm:$0xff]  ;;  %s2505_s17 = scalar_lea.hbm %s2642_s23, %s1485_s22 }
  0x5e   : > { %540 = vperm.xlu0 %1581, %v490_v28   ;;  %545 = vperm.xlu1 %1582, %v491_v29   ;;  %v502_v7 = vld [vmem:[%s2598_s2 + $0x80] sm:$0xff]  ;;  %v1130_v11 = vld [vmem:[%s2600_s4 + $0x8] sm:$0xff]  ;;  %v1598_v14 = vld [vmem:[%s2597_s1 + $0x54] ss:$8 sps:$4 sm:$0xff]  }
  0x5f   : > { %v1129_v10 = vld [vmem:[%s2600_s4] sm:$0xff]  ;;  %v1600_v16 = vld [vmem:[%s2597_s1 + $0x50] ss:$8 sps:$4 sm:$0xff]   ;;  %v1604_v19 = vld [vmem:[%s2597_s1 + $0x74] ss:$8 sps:$4 sm:$0xff]  }
  0x60   : > { %855 = vmatpush2.bf16.msra.mxu0 %v452_v60  ;;  %v1589_v60 = vld [vmem:[%s2597_s1 + $0x24] ss:$8 sps:$4 sm:$0xff]   ;;  %v1597_v12 = vld [vmem:[%s2597_s1 + $0x40] ss:$8 sps:$4 sm:$0xff]   ;;  %v1610_v23 = vld [vmem:[%s2597_s1 + $0x94] ss:$8 sps:$4 sm:$0xff]  }
  0x61   : > { %856 = vmatprep.subr.bf16.mxu0 %v451_v63  ;;  %v509_v63 = vld [vmem:[%s2598_s2 + $0xb8] sm:$0xff]  ;;  %v1603_v18 = vld [vmem:[%s2597_s1 + $0x60] ss:$8 sps:$4 sm:$0xff]   ;;  %v1607_v21 = vld [vmem:[%s2597_s1 + $0x84] ss:$8 sps:$4 sm:$0xff]  }
  0x62   : > { %530 = vperm.xlu0 %1581, %v488_v35   ;;  %535 = vperm.xlu1 %1582, %v489_v37   ;;  %v1612_v24 = vld [vmem:[%s2597_s1 + $0x90] ss:$8 sps:$4 sm:$0xff]   ;;  %v1613_v25 = vld [vmem:[%s2597_s1 + $0xa4] ss:$8 sps:$4 sm:$0xff]   ;;  %v1615_v26 = vld [vmem:[%s2597_s1 + $0xa0] ss:$8 sps:$4 sm:$0xff]  }
  0x63   : > { %v1616_v27 = vld [vmem:[%s2597_s1 + $0xb4] ss:$8 sps:$4 sm:$0xff]   ;;  %v1618_v28 = vld [vmem:[%s2597_s1 + $0xb0] ss:$8 sps:$4 sm:$0xff]   ;;  %v1619_v29 = vld [vmem:[%s2597_s1 + $0xc4] ss:$8 sps:$4 sm:$0xff]  }
  0x64   : > { %857 = vmatpush2.bf16.msra.mxu0 %v450_v4  ;;  %v504_v4 = vld [vmem:[%s2598_s2 + $0x90] sm:$0xff]  ;;  %v1625_v33 = vld [vmem:[%s2597_s1 + $0xe4] ss:$8 sps:$4 sm:$0xff]   ;;  %v1627_v34 = vld [vmem:[%s2597_s1 + $0xe0] ss:$8 sps:$4 sm:$0xff]  }
  0x65   : > { %858 = vmatprep.subr.bf16.mxu0 %v449_v6  ;;  %v1594_v6 = vld [vmem:[%s2597_s1 + $0x30] ss:$8 sps:$4 sm:$0xff]   ;;  %v1628_v35 = vld [vmem:[%s2597_s1 + $0xf4] ss:$8 sps:$4 sm:$0xff]  }
  0x66   : > { %520 = vperm.xlu0 %1581, %v486_v43   ;;  %525 = vperm.xlu1 %1582, %v487_v45   ;;  %v1624_v32 = vld [vmem:[%s2597_s1 + $0xd0] ss:$8 sps:$4 sm:$0xff]  }
  0x68   : > { %859 = vmatpush2.bf16.msra.mxu0 %v448_v13  ;;  %v1196_v13 = vld [vmem:[%s2602_s6] sm:$0xff] }
  0x69   : > { %860 = vmatprep.subr.bf16.mxu0 %v447_v15  ;;  %v1197_v15 = vld [vmem:[%s2602_s6 + $0x8] sm:$0xff] }
  0x6a   : > { %670 = vperm.xlu0 %1581, %v516_v49   ;;  %675 = vperm.xlu1 %1582, %v517_v51  }
  0x6c   : > { %861 = vmatpush2.bf16.msra.mxu0 %v446_v20  ;;  %v1606_v20 = vld [vmem:[%s2597_s1 + $0x70] ss:$8 sps:$4 sm:$0xff]  }
  0x6d   : > { %862 = vmatprep.subr.bf16.mxu0 %v445_v22  ;;  %v1609_v22 = vld [vmem:[%s2597_s1 + $0x80] ss:$8 sps:$4 sm:$0xff]  }
  0x6e   : > { %660 = vperm.xlu0 %1581, %v514_v53   ;;  %665 = vperm.xlu1 %1582, %v515_v55  }
  0x70   : > { %863 = vmatpush2.bf16.msra.mxu0 %v444_v30  ;;  %v1621_v30 = vld [vmem:[%s2597_s1 + $0xc0] ss:$8 sps:$4 sm:$0xff]  }
  0x71   : > { %864 = vmatprep.subr.bf16.mxu0 %v443_v31  ;;  %v1622_v31 = vld [vmem:[%s2597_s1 + $0xd4] ss:$8 sps:$4 sm:$0xff]  }
  0x72   : > { %650 = vperm.xlu0 %1581, %v512_v56   ;;  %655 = vperm.xlu1 %1582, %v513_v57  }
  0x74   : > { %865 = vmatpush2.bf16.msra.mxu0 %v442_v36  ;;  %v1630_v36 = vld [vmem:[%s2597_s1 + $0xf0] ss:$8 sps:$4 sm:$0xff]  }
  0x75   : > { %866 = vmatprep.subr.bf16.mxu0 %v441_v38 }
  0x76   : > { %640 = vperm.xlu0 %1581, %v510_v59   ;;  %645 = vperm.xlu1 %1582, %v511_v61  }
  0x78   : > { %867 = vmatpush2.bf16.msra.mxu0 %v440_v44 }
  0x79   : > { %868 = vmatprep.subr.bf16.mxu0 %v439_v46 }
  0x7a   : > { %630 = vperm.xlu0 %1581, %v508_v62   ;;  %635 = vperm.xlu1 %1582, %v509_v63  }
  0x7c   : > { %869 = vmatpush2.bf16.msra.mxu0 %v438_v50 }
  0x7e   : > { %620 = vperm.xlu0 %1581, %v506_v1   ;;  %625 = vperm.xlu1 %1582, %v507_v3  }
  0x7f   : > { %871 = vmatmul.mubr.bf16.vlgmr.msra.gmra.mxu0 %v1583_v52 }
  0x80   : > { %880 = vmatprep.mubr.bf16.mxu0 %v1586_v54 }
  0x82   : > { %610 = vperm.xlu0 %1581, %v504_v4   ;;  %615 = vperm.xlu1 %1582, %v505_v5  }
  0x86   : > { %600 = vperm.xlu0 %1581, %v502_v7   ;;  %605 = vperm.xlu1 %1582, %v503_v9  }
  0x87   : > { %881 = vmatmul.mubr.bf16.gmra.mxu0 %v1588_v58 }
  0x88   : > { %890 = vmatprep.mubr.bf16.mxu0 %v1589_v60 }
  0x8a   : > { %1133 = vperm.xlu0 %1581, %v1129_v10   ;;  %1138 = vperm.xlu1 %1582, %v1130_v11  }
  0x8e   : > { %1200 = vperm.xlu0 %1581, %v1196_v13   ;;  %1205 = vperm.xlu1 %1582, %v1197_v15  }
  0x8f   : > { %891 = vmatmul.mubr.bf16.gmra.mxu0 %v1591_v0 }
  0x90   : > { %900 = vmatprep.mubr.bf16.mxu0 %v1592_v2 }
  0x97   : > { %901 = vmatmul.mubr.bf16.gmra.mxu0 %v1594_v6 }
  0x98   : > { %910 = vmatprep.mubr.bf16.mxu0 %v1595_v8 }
  0x9f   : > { %911 = vmatmul.mubr.bf16.gmra.mxu0 %v1597_v12 }
  0xa0   : > { %920 = vmatprep.mubr.bf16.mxu0 %v1598_v14 }
  0xa7   : > { %921 = vmatmul.mubr.bf16.gmra.mxu0 %v1600_v16 }
  0xa8   : > { %930 = vmatprep.mubr.bf16.mxu0 %v1601_v17 }
  0xaf   : > { %931 = vmatmul.mubr.bf16.gmra.mxu0 %v1603_v18 }
  0xb0   : > { %940 = vmatprep.mubr.bf16.mxu0 %v1604_v19 }
  0xb7   : > { %941 = vmatmul.mubr.bf16.gmra.mxu0 %v1606_v20 }
  0xb8   : > { %950 = vmatprep.mubr.bf16.mxu0 %v1607_v21 }
  0xbf   : > { %951 = vmatmul.mubr.bf16.gmra.mxu0 %v1609_v22 }
  0xc0   : > { %960 = vmatprep.mubr.bf16.mxu0 %v1610_v23 }
  0xc5   : > { %v2226_v37 = vpop.permute.xlu0 %590  ;;  %v2228_v38 = vpop.permute.xlu1 %580 }
  0xc7   : > { %961 = vmatmul.mubr.bf16.gmra.mxu0 %v1612_v24 }
  0xc8   : > { %970 = vmatprep.mubr.bf16.mxu0 %v1613_v25 }
  0xc9   : > { %v2230_v39 = vpop.permute.xlu0 %595  ;;  %v2232_v40 = vpop.permute.xlu1 %585 }
  0xcd   : > { %v2234_v41 = vpop.permute.xlu0 %570  ;;  %v2236_v42 = vpop.permute.xlu1 %575 }
  0xcf   : > { %971 = vmatmul.mubr.bf16.gmra.mxu0 %v1615_v26 }
  0xd0   : > { %980 = vmatprep.mubr.bf16.mxu0 %v1616_v27 }
  0xd1   : > { %v2238_v43 = vpop.permute.xlu0 %560  ;;  %v2240_v44 = vpop.permute.xlu1 %565 }
  0xd5   : > { %v2242_v45 = vpop.permute.xlu0 %550  ;;  %v2244_v46 = vpop.permute.xlu1 %555 }
  0xd7   : > { %981 = vmatmul.mubr.bf16.gmra.mxu0 %v1618_v28 }
  0xd8   : > { %990 = vmatprep.mubr.bf16.mxu0 %v1619_v29 }
  0xd9   : > { %v2246_v47 = vpop.permute.xlu0 %540  ;;  %v2248_v48 = vpop.permute.xlu1 %545 }
  0xdd   : > { %v531_v49 = vpop.permute.xlu0 %530  ;;  %v536_v50 = vpop.permute.xlu1 %535 }
  0xdf   : > { %991 = vmatmul.mubr.bf16.gmra.mxu0 %v1621_v30 }
  0xe0   : > { %1000 = vmatprep.mubr.bf16.mxu0 %v1622_v31 }
  0xe1   : > { %v521_v51 = vpop.permute.xlu0 %520  ;;  %v526_v54 = vpop.permute.xlu1 %525 }
  0xe5   : > { %v2266_v21 = vpop.permute.xlu0 %670  ;;  %v2270_v23 = vpop.permute.xlu1 %675 }
  0xe7   : > { %1001 = vmatmul.mubr.bf16.gmra.mxu0 %v1624_v32  ;;  %v1633_v32 = vld [vmem:[%s2599_s3 + $0x4] ss:$8 sps:$4 sm:$0xff]  }
  0xe8   : > { %1010 = vmatprep.mubr.bf16.mxu0 %v1625_v33  ;;  %1183 = vmatprep.mubr.bf16.mxu1 %v1633_v32 }
  0xe9   : > { %v2276_v26 = vpop.permute.xlu0 %660  ;;  %v2278_v28 = vpop.permute.xlu1 %665 }
  0xed   : > { %v2282_v31 = vpop.permute.xlu0 %650 }
  0xef   : > { %1011 = vmatmul.mubr.bf16.gmra.mxu0 %v1627_v34  ;;  %v2289_v34 = vpop.permute.xlu1 %655 }
  0xf0   : > { %1020 = vmatprep.mubr.bf16.mxu0 %v1628_v35 }
  0xf7   : > { %1021 = vmatmul.mubr.bf16.gmra.mxu0 %v1630_v36 }
 0x13f   : > { %v872_v52 = vpop.f32.mrf.mxu0 }
 0x140   : > { %v873_v55 = vadd.f32 %v872_v52, %v521_v51 }
 0x141   : > { %v874_v53 = vpop.f32.mrf.mxu0 }
 0x142   : > { %v875_v57 = vadd.f32 %v874_v53, %v521_v51  ;;  %v1031_v60 = vmax.f32 %v873_v55, 0.0  ;;  %v2293_v51 = vpop.permute.xlu1 %645 }
 0x143   : > { %v876_v56 = vpop.f32.mrf.mxu0 }
 0x144   : > { %v877_v58 = vadd.f32 %v876_v56, %v526_v54  ;;  %v1032_v0 = vmax.f32 %v875_v57, 0.0 }
 0x145   : > { %v878_v59 = vpop.f32.mrf.mxu0 }
 0x146   : > { %v1033_v61 = vmax.f32 %v877_v58, 0.0  ;;  %v879_v62 = vadd.f32 %v878_v59, %v526_v54  ;;  %v2297_v56 = vpop.permute.xlu1 %635 }
 0x147   : > { %v882_v63 = vpop.f32.mrf.mxu0  ;;  %2633 = vst [vmem:[#allocation18_spill] sm:$0xff] %v2297_v56 }
 0x148   : > { %v2250_v1 = vpack.c.bf16 %v1033_v61, %v1031_v60  ;;  %v1034_v2 = vmax.f32 %v879_v62, 0.0  ;;  %v883_v5 = vadd.f32 %v882_v63, %v531_v49 }
 0x149   : > { %v884_v3 = vpop.f32.mrf.mxu0 }
 0x14a   : > { %v2252_v4 = vpack.c.bf16 %v1034_v2, %v1032_v0  ;;  %v885_v7 = vadd.f32 %v884_v3, %v531_v49  ;;  %v1035_v10 = vmax.f32 %v883_v5, 0.0  ;;  %v2291_v49 = vpop.permute.xlu0 %640  ;;  %v2301_v61 = vpop.permute.xlu1 %625 }
 0x14b   : > { %v886_v6 = vpop.f32.mrf.mxu0  ;;  %2631 = vst [vmem:[#allocation16_spill] sm:$0xff] %v2291_v49  ;;  %2635 = vst [vmem:[#allocation20_spill] sm:$0xff] %v2301_v61 }
 0x14c   : > { %v887_v8 = vadd.f32 %v886_v6, %v536_v50  ;;  %v1036_v14 = vmax.f32 %v885_v7, 0.0 }
 0x14d   : > { %v888_v9 = vpop.f32.mrf.mxu0 }
 0x14e   : > { %v1037_v11 = vmax.f32 %v887_v8, 0.0  ;;  %v889_v12 = vadd.f32 %v888_v9, %v536_v50  ;;  %v2295_v54 = vpop.permute.xlu0 %630  ;;  %v2305_v3 = vpop.permute.xlu1 %615 }
 0x14f   : > { %v2254_v13 = vpop.f32.mrf.mxu0  ;;  %2632 = vst [vmem:[#allocation17_spill] sm:$0xff] %v2295_v54 }
 0x150   : > { %v2256_v15 = vpack.c.bf16 %v1037_v11, %v1035_v10  ;;  %v1038_v16 = vmax.f32 %v889_v12, 0.0 }
 0x151   : > { %v2258_v17 = vpop.f32.mrf.mxu0 }
 0x152   : > { %v2260_v18 = vpack.c.bf16 %v1038_v16, %v1036_v14  ;;  %v2299_v59 = vpop.permute.xlu0 %620 }
 0x153   : > { %v2262_v19 = vpop.f32.mrf.mxu0  ;;  %2634 = vst [vmem:[#allocation19_spill] sm:$0xff] %v2299_v59 }
 0x155   : > { %v2264_v20 = vpop.f32.mrf.mxu0 }
 0x156   : > { %v2303_v0 = vpop.permute.xlu0 %610 }
 0x157   : > { %v2268_v22 = vpop.f32.mrf.mxu0 }
 0x159   : > { %v2272_v24 = vpop.f32.mrf.mxu0 }
 0x15a   : > { %v601_v16 = vpop.permute.xlu0 %600 }
 0x15b   : > { %v2274_v25 = vpop.f32.mrf.mxu0 }
 0x15d   : > { %v908_v27 = vpop.f32.mrf.mxu0 }
 0x15f   : > { %v2280_v29 = vpop.f32.mrf.mxu0 }
 0x161   : > { %v914_v30 = vpop.f32.mrf.mxu0 }
 0x163   : > { %v2287_v33 = vpop.f32.mrf.mxu0 }
 0x165   : > { %v918_v35 = vpop.f32.mrf.mxu0 }
 0x167   : > { %v922_v36 = vpop.f32.mrf.mxu0 }
 0x169   : > { %v924_v50 = vpop.f32.mrf.mxu0 }
 0x16b   : > { %v926_v52 = vpop.f32.mrf.mxu0 }
 0x16d   : > { %v928_v53 = vpop.f32.mrf.mxu0 }
 0x16e   : > { %v929_v59 = vadd.f32 %v928_v53, %v2236_v42 }
 0x16f   : > { %v932_v55 = vpop.f32.mrf.mxu0 }
 0x171   : > { %v934_v57 = vpop.f32.mrf.mxu0 }
 0x172   : > { %v935_v10 = vadd.f32 %v934_v57, %v2228_v38 }
 0x173   : > { %v936_v58 = vpop.f32.mrf.mxu0 }
 0x174   : > { %v937_v12 = vadd.f32 %v936_v58, %v2232_v40  ;;  %v1056_v57 = vmax.f32 %v935_v10, 0.0  ;;  %v927_v58 = vadd.f32 %v926_v52, %v2236_v42 }
 0x175   : > { %v938_v60 = vpop.f32.mrf.mxu0 }
 0x176   : > { %v939_v5 = vadd.f32 %v938_v60, %v2232_v40  ;;  %v919_v40 = vadd.f32 %v918_v35, %v2240_v44 }
 0x177   : > { %v942_v62 = vpop.f32.mrf.mxu0 }
 0x178   : > { %v943_v8 = vadd.f32 %v942_v62, %v2226_v37  ;;  %v1058_v61 = vmax.f32 %v939_v5, 0.0  ;;  %v925_v62 = vadd.f32 %v924_v50, %v2234_v41  ;;  %v909_v50 = vadd.f32 %v908_v27, %v2244_v46 }
 0x179   : > { %v944_v63 = vpop.f32.mrf.mxu0 }
 0x17a   : > { %v945_v6 = vadd.f32 %v944_v63, %v2226_v37  ;;  %v933_v63 = vadd.f32 %v932_v55, %v2228_v38  ;;  %v606_v37 = vpop.permute.xlu1 %605  ;;  %v1052_v42 = vmax.f32 %v925_v62, 0.0 }
 0x17b   : > { %v946_v2 = vpop.f32.mrf.mxu0 }
 0x17c   : > { %v947_v7 = vadd.f32 %v946_v2, %v2230_v39  ;;  %v1060_v60 = vmax.f32 %v945_v6, 0.0  ;;  %v1059_v2 = vmax.f32 %v943_v8, 0.0  ;;  %v1054_v6 = vmax.f32 %v929_v59, 0.0 }
 0x17d   : > { %v948_v9 = vpop.f32.mrf.mxu0  ;;  %v923_v8 = vadd.f32 %v922_v36, %v2234_v41  ;;  %v1055_v35 = vmax.f32 %v933_v63, 0.0 }
 0x17e   : > { %v949_v11 = vadd.f32 %v948_v9, %v2230_v39  ;;  %v1061_v14 = vmax.f32 %v947_v7, 0.0  ;;  %v1057_v7 = vmax.f32 %v937_v12, 0.0  ;;  %v2323_v9 = vpack.c.bf16 %v1058_v61, %v1056_v57 }
 0x17f   : > { %v952_v32 = vpop.f32.mrf.mxu0  ;;  %v1050_v61 = vmax.f32 %v919_v40, 0.0  ;;  %v1053_v12 = vmax.f32 %v927_v58, 0.0  ;;  %v1046_v40 = vmax.f32 %v909_v50, 0.0 }
 0x180   : > { %v1062_v54 = vmax.f32 %v949_v11, 0.0  ;;  %v953_v49 = vadd.f32 %v952_v32, %v601_v16  ;;  %v2321_v5 = vpack.c.bf16 %v1061_v14, %v1059_v2  ;;  %v2333_v27 = vpack.c.bf16 %v1057_v7, %v1055_v35 }
 0x181   : > { %v954_v56 = vpop.f32.mrf.mxu0  ;;  %v2335_v14 = vpack.c.bf16 %v1054_v6, %v1052_v42  ;;  %v1051_v32 = vmax.f32 %v923_v8, 0.0 }
 0x182   : > { %v2317_v39 = vpack.c.bf16 %v1062_v54, %v1060_v60  ;;  %v955_v38 = vadd.f32 %v954_v56, %v601_v16  ;;  %v915_v54 = vadd.f32 %v914_v30, %v2238_v43  ;;  %v1063_v52 = vmax.f32 %v953_v49, 0.0 }
 0x183   : > { %v956_v53 = vpop.f32.mrf.mxu0  ;;  %v917_v56 = vadd.f32 %v2287_v33, %v2240_v44  ;;  %v913_v49 = vadd.f32 %v2280_v29, %v2238_v43  ;;  %v905_v44 = vadd.f32 %v2272_v24, %v2242_v45  ;;  %v907_v43 = vadd.f32 %v2274_v25, %v2244_v46 }
 0x184   : > { %v957_v55 = vadd.f32 %v956_v53, %v606_v37  ;;  %1151 = vmatprep.subr.bf16.mxu1 %v2317_v39  ;;  %v1064_v41 = vmax.f32 %v955_v38, 0.0  ;;  %v1048_v33 = vmax.f32 %v915_v54, 0.0  ;;  %v2352_v62 = vpack.c.bf16 %v1053_v12, %v1051_v32 }
 0x185   : > { %v958_v10 = vpop.f32.mrf.mxu0  ;;  %1152 = vmatpush1.bf16.msra.mxu1 %v2321_v5  ;;  %v1049_v29 = vmax.f32 %v917_v56, 0.0  ;;  %v895_v53 = vadd.f32 %v2258_v17, %v2246_v47  ;;  %v1047_v6 = vmax.f32 %v913_v49, 0.0  ;;  %v1044_v46 = vmax.f32 %v905_v44, 0.0 }
 0x186   : > { %v1065_v11 = vmax.f32 %v957_v55, 0.0  ;;  %v959_v59 = vadd.f32 %v958_v10, %v606_v37  ;;  %1153 = vmatprep.subr.bf16.mxu1 %v2323_v9  ;;  %v899_v37 = vadd.f32 %v2264_v20, %v2248_v48  ;;  %v2354_v58 = vpack.c.bf16 %v1050_v61, %v1048_v33 }
 0x187   : > { %v962_v30 = vpop.f32.mrf.mxu0  ;;  %v903_v20 = vadd.f32 %v2268_v22, %v2242_v45  ;;  %v1045_v8 = vmax.f32 %v907_v43, 0.0  ;;  %v2367_v17 = vpack.c.bf16 %v1049_v29, %v1047_v6  ;;  %v2371_v45 = vpack.c.bf16 %v1046_v40, %v1044_v46 }
 0x188   : > { %v2337_v36 = vpack.c.bf16 %v1065_v11, %v1063_v52  ;;  %v1066_v16 = vmax.f32 %v959_v59, 0.0  ;;  %v963_v2 = vadd.f32 %v962_v30, %v2303_v0  ;;  %v1042_v54 = vmax.f32 %v899_v37, 0.0 }
 0x189   : > { %v964_v60 = vpop.f32.mrf.mxu0  ;;  %1154 = vmatpush1.bf16.msra.mxu1 %v2333_v27  ;;  %v1043_v52 = vmax.f32 %v903_v20, 0.0 }
 0x18a   : > { %v2344_v63 = vpack.c.bf16 %v1066_v16, %v1064_v41  ;;  %1155 = vmatprep.subr.bf16.mxu1 %v2335_v14  ;;  %v965_v24 = vadd.f32 %v964_v60, %v2303_v0  ;;  %v1067_v25 = vmax.f32 %v963_v2, 0.0  ;;  %v897_v0 = vadd.f32 %v2262_v19, %v2248_v48 }
 0x18b   : > { %v966_v57 = vpop.f32.mrf.mxu0  ;;  %v1040_v48 = vmax.f32 %v895_v53, 0.0  ;;  %v2383_v56 = vpack.c.bf16 %v1045_v8, %v1043_v52 }
 0x18c   : > { %v967_v7 = vadd.f32 %v966_v57, %v2305_v3  ;;  %v1068_v22 = vmax.f32 %v965_v24, 0.0  ;;  %v1041_v59 = vmax.f32 %v897_v0, 0.0 }
 0x18d   : > { %v968_v38 = vpop.f32.mrf.mxu0  ;;  %1156 = vmatpush1.bf16.msra.mxu1 %v2352_v62  ;;  %v2387_v12 = vpack.c.bf16 %v1042_v54, %v1040_v48 }
 0x18e   : > { %v1069_v55 = vmax.f32 %v967_v7, 0.0  ;;  %v969_v50 = vadd.f32 %v968_v38, %v2305_v3  ;;  %1157 = vmatprep.subr.bf16.mxu1 %v2354_v58  ;;  %v893_v3 = vadd.f32 %v2254_v13, %v2246_v47 }
 0x18f   : > { %v2369_v35 = vpop.f32.mrf.mxu0 }
 0x190   : > { %v2373_v10 = vpack.c.bf16 %v1069_v55, %v1067_v25  ;;  %v1070_v42 = vmax.f32 %v969_v50, 0.0  ;;  %v1039_v30 = vmax.f32 %v893_v3, 0.0 }
 0x191   : > { %v2377_v11 = vpop.f32.mrf.mxu0  ;;  %1158 = vmatpush1.bf16.msra.mxu1 %v2367_v17 }
 0x192   : > { %v2380_v19 = vpack.c.bf16 %v1070_v42, %v1068_v22  ;;  %1159 = vmatprep.subr.bf16.mxu1 %v2371_v45  ;;  %v2393_v47 = vpack.c.bf16 %v1041_v59, %v1039_v30 }
 0x193   : > { %v2385_v61 = vpop.f32.mrf.mxu0 }
 0x195   : > { %v2389_v41 = vpop.f32.mrf.mxu0  ;;  %1160 = vmatpush1.bf16.msra.mxu1 %v2383_v56 }
 0x196   : > { %1161 = vmatprep.subr.bf16.mxu1 %v2387_v12 }
 0x197   : > { %v2395_v13 = vpop.f32.mrf.mxu0 }
 0x199   : > { %v2397_v16 = vpop.f32.mrf.mxu0  ;;  %1162 = vmatpush1.bf16.msra.mxu1 %v2393_v47 }
 0x19a   : > { %1163 = vmatprep.subr.bf16.mxu1 %v2260_v18 }
 0x19b   : > { %v2401_v49 = vpop.f32.mrf.mxu0 }
 0x19d   : > { %v988_v32 = vpop.f32.mrf.mxu0  ;;  %1164 = vmatpush1.bf16.msra.mxu1 %v2256_v15 }
 0x19e   : > { %1165 = vmatprep.subr.bf16.mxu1 %v2252_v4 }
 0x19f   : > { %v992_v60 = vpop.f32.mrf.mxu0 }
 0x1a1   : > { %v994_v44 = vpop.f32.mrf.mxu0  ;;  %1166 = vmatpush1.bf16.msra.mxu1 %v2250_v1 }
 0x1a3   : > { %v996_v33 = vpop.f32.mrf.mxu0 }
 0x1a5   : > { %v998_v2 = vpop.f32.mrf.mxu0 }
 0x1a7   : > { %v1002_v37 = vpop.f32.mrf.mxu0 }
 0x1a9   : > { %v1004_v43 = vpop.f32.mrf.mxu0 }
 0x1ab   : > { %v1006_v29 = vpop.f32.mrf.mxu0 }
 0x1ad   : > { %v1008_v57 = vpop.f32.mrf.mxu0 }
 0x1ae   : > { %v1009_v3 = vadd.f32 %v1008_v57, %v2289_v34 }
 0x1af   : > { %v1012_v40 = vpop.f32.mrf.mxu0 }
 0x1b0   : > { %v1013_v30 = vadd.f32 %v1012_v40, %v2276_v26 }
 0x1b1   : > { %v1014_v24 = vpop.f32.mrf.mxu0 }
 0x1b2   : > { %v1015_v54 = vadd.f32 %v1014_v24, %v2276_v26  ;;  %v1007_v24 = vadd.f32 %v1006_v29, %v2289_v34  ;;  %v1003_v26 = vadd.f32 %v1002_v37, %v2282_v31  ;;  %v1087_v40 = vmax.f32 %v1013_v30, 0.0  ;;  %v2640_v30 = vld [vmem:[#allocation19_spill] sm:$0xff] }
 0x1b3   : > { %v1016_v7 = vpop.f32.mrf.mxu0  ;;  %v997_v34 = vadd.f32 %v996_v33, %v2293_v51 }
 0x1b4   : > { %v1017_v22 = vadd.f32 %v1016_v7, %v2278_v28  ;;  %v1086_v7 = vmax.f32 %v1009_v3, 0.0  ;;  %v1085_v29 = vmax.f32 %v1007_v24, 0.0  ;;  %v1083_v37 = vmax.f32 %v1003_v26, 0.0 }
 0x1b5   : > { %v1018_v53 = vpop.f32.mrf.mxu0  ;;  %v1081_v33 = vmax.f32 %v997_v34, 0.0 }
 0x1b6   : > { %v1019_v46 = vadd.f32 %v1018_v53, %v2278_v28  ;;  %v999_v28 = vadd.f32 %v998_v2, %v2293_v51  ;;  %v2637_v2 = vld [vmem:[#allocation18_spill] sm:$0xff] }
 0x1b7   : > { %v1022_v20 = vpop.f32.mrf.mxu0  ;;  %v987_v51 = vadd.f32 %v2401_v49, %v2637_v2 }
 0x1b8   : > { %v1023_v50 = vadd.f32 %v1022_v20, %v2266_v21  ;;  %v1090_v52 = vmax.f32 %v1019_v46, 0.0  ;;  %v1089_v20 = vmax.f32 %v1017_v22, 0.0 }
 0x1b9   : > { %v1024_v6 = vpop.f32.mrf.mxu0 }
 0x1ba   : > { %v1025_v25 = vadd.f32 %v1024_v6, %v2266_v21  ;;  %v1091_v53 = vmax.f32 %v1023_v50, 0.0  ;;  %v1005_v6 = vadd.f32 %v1004_v43, %v2282_v31  ;;  %v2636_v43 = vld [vmem:[#allocation16_spill] sm:$0xff]  ;;  %v989_v50 = vadd.f32 %v988_v32, %v2637_v2 }
 0x1bb   : > { %v1026_v38 = vpop.f32.mrf.mxu0  ;;  %v995_v46 = vadd.f32 %v994_v44, %v2636_v43  ;;  %v993_v31 = vadd.f32 %v992_v60, %v2636_v43  ;;  %v2639_v32 = vld [vmem:[#allocation20_spill] sm:$0xff] }
 0x1bc   : > { %v1027_v55 = vadd.f32 %v1026_v38, %v2270_v23  ;;  %v1092_v48 = vmax.f32 %v1025_v25, 0.0  ;;  %v1088_v38 = vmax.f32 %v1015_v54, 0.0  ;;  %v1084_v25 = vmax.f32 %v1005_v6, 0.0 }
 0x1bd   : > { %v1028_v0 = vpop.f32.mrf.mxu0  ;;  %v1080_v22 = vmax.f32 %v995_v46, 0.0  ;;  %v979_v3 = vadd.f32 %v2389_v41, %v2639_v32  ;;  %v977_v49 = vadd.f32 %v2385_v61, %v2639_v32  ;;  %v1077_v6 = vmax.f32 %v987_v51, 0.0  ;;  %v1636_v61 = vld [vmem:[%s2601_s5 + $0x4] ss:$8 sps:$4 sm:$0xff]  }
 0x1be   : > { %v1029_v8 = vadd.f32 %v1028_v0, %v2270_v23  ;;  %v1093_v42 = vmax.f32 %v1027_v55, 0.0  ;;  %v2422_v57 = vpack.c.bf16 %v1090_v52, %v1088_v38  ;;  %v2430_v55 = vpack.c.bf16 %v1089_v20, %v1087_v40 }
 0x1bf   : > { %v1082_v0 = vmax.f32 %v999_v28, 0.0  ;;  %v2433_v54 = vpack.c.bf16 %v1086_v7, %v1084_v25  ;;  %v1078_v52 = vmax.f32 %v989_v50, 0.0  ;;  %v1074_v24 = vmax.f32 %v979_v3, 0.0 }
 0x1c0   : > { %v1094_v59 = vmax.f32 %v1029_v8, 0.0  ;;  %v2419_v23 = vpack.c.bf16 %v1093_v42, %v1091_v53  ;;  %v2638_v8 = vld [vmem:[#allocation17_spill] sm:$0xff]  ;;  %v1121_v42 = vpack.c.bf16 %v1085_v29, %v1083_v37  ;;  %v973_v41 = vadd.f32 %v2369_v35, %v2640_v30 }
 0x1c1   : > { %v985_v44 = vadd.f32 %v2397_v16, %v2638_v8  ;;  %v983_v60 = vadd.f32 %v2395_v13, %v2638_v8  ;;  %v975_v16 = vadd.f32 %v2377_v11, %v2640_v30  ;;  %v1073_v7 = vmax.f32 %v977_v49, 0.0  ;;  %v1631_v35 = vld [vmem:[%s2599_s3] ss:$8 sps:$4 sm:$0xff]  }
 0x1c2   : > { %v2416_v21 = vpack.c.bf16 %v1094_v59, %v1092_v48  ;;  %v1120_v48 = vpack.c.bf16 %v1082_v0, %v1080_v22  ;;  %v1079_v59 = vmax.f32 %v993_v31, 0.0  ;;  %v1071_v11 = vmax.f32 %v973_v41, 0.0 }
 0x1c3   : > { %v1076_v53 = vmax.f32 %v985_v44, 0.0  ;;  %v1075_v28 = vmax.f32 %v983_v60, 0.0  ;;  %v1072_v13 = vmax.f32 %v975_v16, 0.0 }
 0x1c4   : > { %1167 = vmatprep.subr.bf16.mxu1 %v2416_v21  ;;  %v1119_v38 = vpack.c.bf16 %v1081_v33, %v1079_v59  ;;  %v1115_v43 = vpack.c.bf16 %v1073_v7, %v1071_v11 }
 0x1c5   : > { %1168 = vmatpush2.bf16.msra.mxu1 %v2419_v23  ;;  %v1118_v20 = vpack.c.bf16 %v1078_v52, %v1076_v53  ;;  %v1117_v26 = vpack.c.bf16 %v1077_v6, %v1075_v28  ;;  %v1116_v40 = vpack.c.bf16 %v1074_v24, %v1072_v13 }
 0x1c6   : > { %1169 = vmatprep.subr.bf16.mxu1 %v2422_v57 }
 0x1c9   : > { %1170 = vmatpush2.bf16.msra.mxu1 %v2430_v55 }
 0x1ca   : > { %1171 = vmatprep.subr.bf16.mxu1 %v2433_v54 }
 0x1cd   : > { %1172 = vmatpush2.bf16.msra.mxu1 %v1121_v42 }
 0x1ce   : > { %1173 = vmatprep.subr.bf16.mxu1 %v1120_v48 }
 0x1d1   : > { %1174 = vmatpush2.bf16.msra.mxu1 %v1119_v38 }
 0x1d2   : > { %1175 = vmatprep.subr.bf16.mxu1 %v1118_v20 }
 0x1d5   : > { %1176 = vmatpush2.bf16.msra.mxu1 %v1117_v26 }
 0x1d6   : > { %1177 = vmatprep.subr.bf16.mxu1 %v1116_v40 }
 0x1d9   : > { %1178 = vmatpush2.bf16.msra.mxu1 %v1115_v43 }
 0x1da   : > { %1179 = vmatprep.subr.bf16.mxu1 %v2380_v19 }
 0x1dd   : > { %1180 = vmatpush2.bf16.msra.mxu1 %v2373_v10 }
 0x1de   : > { %1181 = vmatprep.subr.bf16.mxu1 %v2344_v63 }
 0x1e1   : > { %1182 = vmatpush2.bf16.msra.mxu1 %v2337_v36 }
 0x1e2   : > { %1218 = vmatprep.subr.bf16.mxu1 %v2317_v39 }
 0x1e4   : > { %1184 = vmatmul.mubr.bf16.vlgmr.msra.gmra.mxu1 %v1631_v35 }
 0x1e5   : > { %1219 = vmatpush1.bf16.msra.mxu1 %v2321_v5  ;;  %1250 = vmatprep.mubr.bf16.mxu1 %v1636_v61 }
 0x1e6   : > { %1220 = vmatprep.subr.bf16.mxu1 %v2323_v9  ;;  %v1139_v9 = vpop.permute.xlu1 %1138 }
 0x1e9   : > { %1221 = vmatpush1.bf16.msra.mxu1 %v2333_v27 }
 0x1ea   : > { %1222 = vmatprep.subr.bf16.mxu1 %v2335_v14 }
 0x1ed   : > { %1223 = vmatpush1.bf16.msra.mxu1 %v2352_v62 }
 0x1ee   : > { %1224 = vmatprep.subr.bf16.mxu1 %v2354_v58 }
 0x1f1   : > { %1225 = vmatpush1.bf16.msra.mxu1 %v2367_v17 }
 0x1f2   : > { %1226 = vmatprep.subr.bf16.mxu1 %v2371_v45 }
 0x1f5   : > { %1227 = vmatpush1.bf16.msra.mxu1 %v2383_v56 }
 0x1f6   : > { %1228 = vmatprep.subr.bf16.mxu1 %v2387_v12 }
 0x1f9   : > { %1229 = vmatpush1.bf16.msra.mxu1 %v2393_v47 }
 0x1fa   : > { %1230 = vmatprep.subr.bf16.mxu1 %v2260_v18 }
 0x1fd   : > { %1231 = vmatpush1.bf16.msra.mxu1 %v2256_v15 }
 0x1fe   : > { %1232 = vmatprep.subr.bf16.mxu1 %v2252_v4  ;;  %v1134_v4 = vpop.permute.xlu0 %1133 }
 0x201   : > { %1233 = vmatpush1.bf16.msra.mxu1 %v2250_v1  ;;  %v1634_v1 = vld [vmem:[%s2601_s5] ss:$8 sps:$4 sm:$0xff]  }
 0x202   : > { %1234 = vmatprep.subr.bf16.mxu1 %v2416_v21 }
 0x205   : > { %1235 = vmatpush2.bf16.msra.mxu1 %v2419_v23 }
 0x206   : > { %1236 = vmatprep.subr.bf16.mxu1 %v2422_v57 }
 0x209   : > { %1237 = vmatpush2.bf16.msra.mxu1 %v2430_v55 }
 0x20a   : > { %1238 = vmatprep.subr.bf16.mxu1 %v2433_v54 }
 0x20d   : > { %1239 = vmatpush2.bf16.msra.mxu1 %v1121_v42 }
 0x20e   : > { %1240 = vmatprep.subr.bf16.mxu1 %v1120_v48 }
 0x211   : > { %1241 = vmatpush2.bf16.msra.mxu1 %v1119_v38 }
 0x212   : > { %1242 = vmatprep.subr.bf16.mxu1 %v1118_v20 }
 0x215   : > { %1243 = vmatpush2.bf16.msra.mxu1 %v1117_v26 }
 0x216   : > { %1244 = vmatprep.subr.bf16.mxu1 %v1116_v40 }
 0x219   : > { %1245 = vmatpush2.bf16.msra.mxu1 %v1115_v43 }
 0x21a   : > { %1246 = vmatprep.subr.bf16.mxu1 %v2380_v19 }
 0x21d   : > { %1247 = vmatpush2.bf16.msra.mxu1 %v2373_v10 }
 0x21e   : > { %1248 = vmatprep.subr.bf16.mxu1 %v2344_v63 }
 0x221   : > { %1249 = vmatpush2.bf16.msra.mxu1 %v2337_v36 }
 0x224   : > { %1251 = vmatmul.mubr.bf16.vlgmr.msra.gmra.mxu1 %v1634_v1 }
 0x2a4   : > { %v1185_v15 = vpop.f32.mrf.mxu1 }
 0x2a5   : > { %v1186_v18 = vadd.f32 %v1185_v15, %v1134_v4 }
 0x2a6   : > { %v1187_v39 = vpop.f32.mrf.mxu1 }
 0x2a7   : > { %1261 = vst [vmem:[%s347_s7] sm:$0xff] %v1186_v18  ;;  %v1188_v5 = vadd.f32 %v1187_v39, %v1134_v4 }
 0x2a8   : > { %v1189_v27 = vpop.f32.mrf.mxu1 }
 0x2a9   : > { %1262 = vst [vmem:[%s347_s7 + $0x8] sm:$0xff] %v1188_v5  ;;  %v1190_v14 = vadd.f32 %v1189_v27, %v1139_v9 }
 0x2aa   : > { %v1191_v36 = vpop.f32.mrf.mxu1 }
 0x2ab   : > { %1263 = vst [vmem:[%s347_s7 + $0x10] sm:$0xff] %v1190_v14  ;;  %v1192_v63 = vadd.f32 %v1191_v36, %v1139_v9 }
 0x2ad   : > { %1264 = vst [vmem:[%s347_s7 + $0x18] sm:$0xff] %v1192_v63 }
 0x2ae   : > { %1678 = shalt.err (!%p1675_p3)
}
 0x2af   : > { %s1679_s18 = scalar_lea.hbm %s2505_s17, 512  ;;  %s1683_s30 = scalar_lea.hbm %s2642_s23, 2048 }
 0x2b0   : > { %p1680_p7 = scmp.ne.s32.totalorder %s2505_s17, %s1679_s18  ;;  %p1684_p13 = scmp.lt.s32.totalorder %s2505_s17, %s2642_s23 }
 0x2b1   : > { %p1685_p2 = scmp.lt.s32.totalorder %s1683_s30, %s1679_s18 }
 0x2b2   : > { %p1681_p10 = pnand %p1680_p7, %p1913_p9 }
 0x2b3   : > { %p1686_p8 = por %p1685_p2, %p1684_p13 }
 0x2b4   : > { %p1682_p11 = pneg %p1681_p10 }
 0x2b6   : > { %p1687_p0 = pnand %p1686_p8, %p1682_p11 }
 0x2b8   : > { %1690 = shalt.err (!%p1687_p0)
}
 0x2b9   : > { %s2618_s27 = smov 256   ;;  %s1800_s19 = smov 512   ;;  %v1201_v62 = vpop.permute.xlu0 %1200  ;;  %v1206_v19 = vpop.permute.xlu1 %1205 }
 0x2ba   : > { %s1801_s16 = smov 16   ;;  %s354_s18 = scalar_lea.vmem [#allocation6], %s1443_s21 }
 0x2bb   : > { %1493 = dma.vmem_to_hbm [thread:$0]  (%p1913_p9), %s2498_s20, 512, %s2505_s17, %s1270_s8, %s2618_s27, %s1800_s19, %s1801_s16  }
 0x2bc   : > { %s1308_s11 = sshll.u32 %s354_s18, 4  ;;  %s2643_s21 = sld [smem:[#allocation22_spill]]  ;;  %s2535_s11 = int_to_ptr.vmem [resolvable:$true] %s1308_s11 }
 0x2bd   : > { %s1275_s7 = scalar_lea.sflag [#allocation7], %s1948_s25  ;;  %s1691_s30 = scalar_lea.vmem %s2535_s11, 512 }
 0x2be   : > { %p1692_p1 = scmp.ne.s32.totalorder %s2535_s11, %s1691_s30  ;;  %s1802_s9 = smov [#allocation6]  }
 0x2bf   : > { %s1695_s15 = sshll.u32 %s1802_s9, 4  ;;  %s1696_s15 = int_to_ptr.vmem [resolvable:$false] %s1695_s15 }
 0x2c0   : > { %p1693_p4 = pnand %p1692_p1, %p1913_p9  ;;  %s1697_s27 = scalar_lea.vmem %s1696_s15, 1024 }
 0x2c1   : > { %p1698_p6 = scmp.lt.s32.totalorder %s2535_s11, %s1696_s15  ;;  %p1699_p3 = scmp.lt.s32.totalorder %s1697_s27, %s1691_s30 }
 0x2c2   : > { %s2542_s8 = scalar_lea.hbm %s2643_s21, %s1485_s22  ;;  %p1694_p5 = pneg %p1693_p4 }
 0x2c3   : > { %p1700_p7 = por %p1699_p3, %p1698_p6 }
 0x2c5   : > { %p1701_p10 = pnand %p1700_p7, %p1694_p5 }
 0x2e4   : > { %v1252_v58 = vpop.f32.mrf.mxu1 }
 0x2e5   : > { %v1253_v17 = vadd.f32 %v1252_v58, %v1201_v62 }
 0x2e6   : > { %v1254_v45 = vpop.f32.mrf.mxu1 }
 0x2e7   : > { %1265 = vst [vmem:[%s354_s18] sm:$0xff] %v1253_v17  ;;  %v1255_v10 = vadd.f32 %v1254_v45, %v1201_v62 }
 0x2e8   : > { %v1256_v56 = vpop.f32.mrf.mxu1 }
 0x2e9   : > { %1266 = vst [vmem:[%s354_s18 + $0x8] sm:$0xff] %v1255_v10  ;;  %v1257_v12 = vadd.f32 %v1256_v56, %v1206_v19 }
 0x2ea   : > { %v1258_v47 = vpop.f32.mrf.mxu1 }
 0x2eb   : > { %1267 = vst [vmem:[%s354_s18 + $0x10] sm:$0xff] %v1257_v12  ;;  %v1259_v21 = vadd.f32 %v1258_v47, %v1206_v19 }
 0x2ed   : > { %1268 = vst [vmem:[%s354_s18 + $0x18] sm:$0xff] %v1259_v21 }
 0x2ee   : > { %1704 = shalt.err (!%p1701_p10)
}
 0x2ef   : > { %s1705_s13 = scalar_lea.hbm %s2542_s8, 512  ;;  %s1709_s18 = scalar_lea.hbm %s2643_s21, 2048 }
 0x2f0   : > { %p1706_p11 = scmp.ne.s32.totalorder %s2542_s8, %s1705_s13  ;;  %p1710_p8 = scmp.lt.s32.totalorder %s2542_s8, %s2643_s21 }
 0x2f1   : > { %p1711_p0 = scmp.lt.s32.totalorder %s1709_s18, %s1705_s13 }
 0x2f2   : > { %p1707_p13 = pnand %p1706_p11, %p1913_p9 }
 0x2f3   : > { %p1712_p1 = por %p1711_p0, %p1710_p8 }
 0x2f4   : > { %p1708_p2 = pneg %p1707_p13 }
 0x2f6   : > { %p1713_p4 = pnand %p1712_p1, %p1708_p2 }
 0x2f8   : > { %1716 = shalt.err (!%p1713_p4)
}
 0x2f9   : > { %s2644_s27 = smov 256  }
 0x2fa   : > { %1494 = dma.vmem_to_hbm [thread:$0]  (%p1913_p9), %s2535_s11, 512, %s2542_s8, %s1275_s7, %s2644_s27, %s1800_s19, %s1801_s16  }
 0x2fb PF: > { %s2645_s30 = sld [smem:[#allocation11_spill]]  ;;  %p1509_p5 = scmp.ge.s32.totalorder %s1791_s12, 2 }
 0x2fd   : > { %p1502_p6 = pnand %p1509_p5, %p1919_p12 }
 0x2ff   : > { %p1503_p3 = pneg %p1502_p6 }
 0x301   : > { %s1323_s9 = sand.u32 1, %s2645_s30  }
 0x302   : > { %s1324_s15 = scalar_lea.sflag [#allocation4], %s1323_s9 }
 0x303   : > { %1754 = dma.done.wait (%p1503_p3), %s1324_s15, 512  }
 0x304   : > { %1756 = vsyncadd (%p1503_p3), %s1324_s15, 4294966784  ;;  %s1333_s13 = scalar_lea.sflag [#allocation7], %s1323_s9 }
 0x305   : > { %1758 = dma.done.wait (%p1503_p3), %s1333_s13, 512  }
 0x306   : > { %1760 = vsyncadd (%p1503_p3), %s1333_s13, 4294966784  ;;  %s28_s12 = sadd.s32 1, %s1791_s12   ;;  %s2646_s9 = sld [smem:[#allocation12_spill]] }
 0x307   : > { %p25_p7 = scmp.ge.s32.totalorder %s28_s12, 6   ;;  %s2647_s14 = sld [smem:[#allocation13_spill]] }
 0x308   : > { %s2648_s11 = sld [smem:[#allocation14_spill]]  ;;  %s2649_s27 = smov %s1767_s28 }
 0x309   : > { %s2650_s28 = smov %s1771_s29  ;;  %s2651_s29 = smov %s1926_s26 }
 0x30a   : > { %s2652_s30 = smov %s1783_s10  ;;  %27 = sbr.rel (!%p25_p7) target bundleno = 12 (0xc), region = 110 }
 0x30d   : > { %s2653_s10 = smov %s2647_s14 }
 0x30f   :  { %1338 = vsyncpa [#allocation3], 1 }
 0x310   :  { %1340 = vsyncpa [#allocation3 + $0x1], 1 }
 0x311   :  { %1341 = vsyncpa [#allocation4], 1 }
 0x312   :  { %1343 = vsyncpa [#allocation4 + $0x1], 1 }
 0x313   :  { %1344 = vsyncpa [#allocation7], 1 }
 0x314   :  { %1346 = vsyncpa [#allocation7 + $0x1], 1 }

</bundles_post_ra>
